<compile_context>
chip_gen: v6e
topology: v6e:2x2x1
jax: 0.10.0
libtpu: 0.0.40
codegen_flags: <defaults>
</compile_context>

<pallas_src>
import functools

import jax
import jax.numpy as jnp
from jax.experimental import pallas as pl
from jax.experimental.pallas import tpu as pltpu


# ----------------------------------------------------------------------------
# Pallas kernel: full MLP forward for one tile of points (lane axis = points).
# ----------------------------------------------------------------------------
def _softplus_beta_folded(z):
    # z already equals beta * (W x + b) because beta was folded into W and b.
    # PyTorch nn.Softplus(beta=100, threshold=20):
    #   out = z / beta             if z > 20
    #       = log1p(exp(z)) / beta otherwise
    # The trailing 1/beta is folded into the NEXT layer's weights, so here we
    # return beta * softplus(x) = where(z > 20, z, log1p(exp(z))).
    safe = jnp.minimum(z, 20.0)  # keep exp() finite in the masked-off branch
    return jnp.where(z > 20.0, z, jnp.log1p(jnp.exp(safe)))


def _mlp_kernel(num_layers, x_ref, *refs):
    # refs = (w0, b0, w1, b1, ..., w_{L-1}, b_{L-1}, o_ref)
    o_ref = refs[-1]
    wb_refs = refs[:-1]

    h = x_ref[...].astype(jnp.float32)          # (d_in, tile_n) f32
    for l in range(num_layers):
        w = wb_refs[2 * l][...]                 # (d_out_l, d_in_l) bf16
        b = wb_refs[2 * l + 1][...]             # (d_out_l, 1) f32
        # MXU in bf16, f32 accumulation; bias add + activation stay f32.
        z = jnp.dot(w, h.astype(jnp.bfloat16),
                    preferred_element_type=jnp.float32) + b
        h = _softplus_beta_folded(z) if l < num_layers - 1 else z
    o_ref[...] = h.astype(o_ref.dtype)


# ----------------------------------------------------------------------------
# Wrapper
# ----------------------------------------------------------------------------
def color_mlp_forward(x_fm, weights, biases, *, tile_n=512):
    """x_fm: (d_in, N) f32 (features on sublane, points on lane).
    weights[l]: (d_{l+1}, d_l) bf16 (beta-folded).  biases[l]: (d_{l+1}, 1) f32.
    Returns (d_out, N) f32."""
    d_in, N = x_fm.shape
    num_layers = len(weights)
    d_out = weights[-1].shape[0]

    # Pad the point (lane) axis to a tile multiple; slice the result back.
    n_pad = (-N) % tile_n
    if n_pad:
        x_fm = jnp.pad(x_fm, ((0, 0), (0, n_pad)))
    Np = N + n_pad
    grid = (Np // tile_n,)

    # x / out tiled over the point (lane) axis; weights & biases are resident
    # full-array blocks (constant index_map -> fetched once).
    in_specs = [pl.BlockSpec((d_in, tile_n), lambda i: (0, i))]
    flat_args = [x_fm]
    for w, b in zip(weights, biases):
        in_specs.append(pl.BlockSpec(w.shape, lambda i: (0, 0)))
        in_specs.append(pl.BlockSpec(b.shape, lambda i: (0, 0)))
        flat_args += [w, b]
    out_spec = pl.BlockSpec((d_out, tile_n), lambda i: (0, i))

    # Advisory cost estimate for the surrounding XLA schedule.
    mm_terms = sum(int(w.shape[0]) * int(w.shape[1]) for w in weights)
    hidden_units = sum(int(w.shape[0]) for w in weights[:-1])
    param_bytes = sum(w.size * w.dtype.itemsize for w in weights) \
        + sum(b.size * b.dtype.itemsize for b in biases)
    cost = pl.CostEstimate(
        flops=2 * Np * mm_terms,
        transcendentals=2 * Np * hidden_units,          # exp + log1p per hidden unit
        bytes_accessed=Np * (d_in + d_out) * 4 + param_bytes,
    )

    kernel = functools.partial(_mlp_kernel, num_layers)

    out = pl.pallas_call(
        kernel,
        out_shape=jax.ShapeDtypeStruct((d_out, Np), jnp.float32),
        grid_spec=pltpu.PrefetchScalarGridSpec(
            num_scalar_prefetch=0,
            grid=grid,
            in_specs=in_specs,
            out_specs=out_spec,
        ),
        compiler_params=pltpu.CompilerParams(
            dimension_semantics=("parallel",)),
        cost_estimate=cost,
    )(*flat_args)

    return out[:, :N] if n_pad else out


# ----------------------------------------------------------------------------
# Parameter construction (mirrors ColorMLP.__init__ with weight_norm) and
# packing (beta folding + bf16 cast) for the kernel.
# ----------------------------------------------------------------------------
def make_params(key, d_in, d_out, width, depth, weight_norm=True):
    """Returns torch-like f32 params: list of (w_eff (dout,din), b (dout,))."""
    dims = [d_in] + [width] * depth + [d_out]
    params = []
    for l in range(len(dims) - 1):
        din, dout = dims[l], dims[l + 1]
        key, kv, kg, kb = jax.random.split(key, 4)
        v = jax.random.normal(kv, (dout, din), jnp.float32) * 0.1
        g = 1.0 + 0.01 * jax.random.normal(kg, (dout, 1), jnp.float32)
        b = 0.01 * jax.random.normal(kb, (dout,), jnp.float32)
        if weight_norm:
            norm = jnp.sqrt(jnp.sum(v * v, axis=1, keepdims=True))
            w_eff = g * v / norm            # effective weight of weight_norm
        else:
            w_eff = v
        params.append((w_eff, b))
    return params


def pack_for_kernel(params, beta=100.0):
    """Fold Softplus beta into adjacent layers; emit bf16 W and f32 (d,1) b."""
    L = len(params)
    weights, biases = [], []
    for l, (w, b) in enumerate(params):
        w_s = 1.0
        b_s = 1.0
        if l < L - 1:        # layer is followed by softplus: emit beta*(Wx+b)
            w_s *= beta
            b_s *= beta
        if l > 0:            # layer consumes beta*softplus(..): absorb 1/beta
            w_s *= 1.0 / beta
        weights.append((w * w_s).astype(jnp.bfloat16))
        biases.append((b * b_s).reshape(-1, 1).astype(jnp.float32))
    return weights, biases


def reference_forward(x, params, beta=100.0, threshold=20.0):
    """Plain-JAX f32 reference matching the PyTorch module (rows = points)."""
    h = x
    L = len(params)
    for l, (w, b) in enumerate(params):
        h = h @ w.T + b
        if l < L - 1:
            bh = beta * h
            h = jnp.where(bh > threshold, h,
                          jnp.log1p(jnp.exp(jnp.minimum(bh, threshold))) / beta)
    return h


# ----------------------------------------------------------------------------
if __name__ == "__main__":
    key = jax.random.PRNGKey(0)

    d_in, d_out, width, depth = 6, 3, 64, 2     # dims = [6, 64, 64, 3]
    N = 2000                                    # points (non-multiple: exercises padding)
    tile_n = 512                                # -> grid = (4,): feeds both v7x TCs

    kp, kx = jax.random.split(key)
    params = make_params(kp, d_in, d_out, width, depth, weight_norm=True)
    weights, biases = pack_for_kernel(params)
    x = jax.random.normal(kx, (N, d_in), jnp.float32)

    # Kernel works in features x points layout; transpose is wrapper-side
    # layout plumbing only.
    out_fm = color_mlp_forward(jnp.asarray(x.T), weights, biases, tile_n=tile_n)
    out_fm = jax.block_until_ready(out_fm)
    out = out_fm.T                              # back to (N, d_out)

    ref = reference_forward(x, params)
    assert out.shape == (N, d_out)
    max_err = float(jnp.max(jnp.abs(out - ref)))
    # bf16 MXU inputs (f32 accumulation): tolerance loosened vs a pure-f32 run.
    assert jnp.allclose(out, ref, atol=5e-2, rtol=5e-2), \
        f"mismatch vs JAX reference (max abs err {max_err:.4e})"

    print("KERNEL_OK")
</pallas_src>

<mosaic_0001>
module attributes {stable_mosaic.version = 11 : i64} {
  func.func @_mlp_kernel(%arg0: i32, %arg1: memref<6x512xf32, #tpu.memory_space<vmem>>, %arg2: memref<64x6xbf16, #tpu.memory_space<vmem>>, %arg3: memref<64x1xf32, #tpu.memory_space<vmem>>, %arg4: memref<64x64xbf16, #tpu.memory_space<vmem>>, %arg5: memref<64x1xf32, #tpu.memory_space<vmem>>, %arg6: memref<3x64xbf16, #tpu.memory_space<vmem>>, %arg7: memref<3x1xf32, #tpu.memory_space<vmem>>, %arg8: memref<3x512xf32, #tpu.memory_space<vmem>>) attributes {dimension_semantics = [#tpu.dimension_semantics<parallel>], iteration_bounds = array<i64: 4>, scalar_prefetch = 0 : i64, scratch_operands = 0 : i64, tpu.core_type = #tpu.core_type<tc>, window_params = [{transform_indices = @transform_0, window_bounds = array<i64: 6, 512>}, {pipeline_mode = #tpu.pipeline_mode<synchronous>, transform_indices = @transform_1, window_bounds = array<i64: 64, 6>}, {pipeline_mode = #tpu.pipeline_mode<synchronous>, transform_indices = @transform_2, window_bounds = array<i64: 64, 1>}, {pipeline_mode = #tpu.pipeline_mode<synchronous>, transform_indices = @transform_3, window_bounds = array<i64: 64, 64>}, {pipeline_mode = #tpu.pipeline_mode<synchronous>, transform_indices = @transform_4, window_bounds = array<i64: 64, 1>}, {pipeline_mode = #tpu.pipeline_mode<synchronous>, transform_indices = @transform_5, window_bounds = array<i64: 3, 64>}, {pipeline_mode = #tpu.pipeline_mode<synchronous>, transform_indices = @transform_6, window_bounds = array<i64: 3, 1>}, {transform_indices = @transform_7, window_bounds = array<i64: 3, 512>}]} {
    %c0 = arith.constant 0 : index
    %c0_0 = arith.constant 0 : index
    %0 = vector.load %arg1[%c0, %c0_0] : memref<6x512xf32, #tpu.memory_space<vmem>>, vector<6x512xf32>
    %c0_1 = arith.constant 0 : index
    %c0_2 = arith.constant 0 : index
    %1 = vector.load %arg2[%c0_1, %c0_2] : memref<64x6xbf16, #tpu.memory_space<vmem>>, vector<64x6xbf16>
    %c0_3 = arith.constant 0 : index
    %c0_4 = arith.constant 0 : index
    %2 = vector.load %arg3[%c0_3, %c0_4] : memref<64x1xf32, #tpu.memory_space<vmem>>, vector<64x1xf32>
    %3 = arith.truncf %0 : vector<6x512xf32> to vector<6x512xbf16>
    %cst = arith.constant dense<0.000000e+00> : vector<64x512xf32>
    %4 = tpu.matmul %1, %3, %cst {dimension_numbers = #tpu.dot_dimension_numbers<[1], [0], [0], [1], [0, 0, 1, 1], [], []>} : vector<64x6xbf16>, vector<6x512xbf16>, vector<64x512xf32> -> vector<64x512xf32>
    %5 = vector.broadcast %2 : vector<64x1xf32> to vector<64x512xf32>
    %6 = arith.addf %4, %5 : vector<64x512xf32>
    %cst_5 = arith.constant 2.000000e+01 : f32
    %7 = vector.broadcast %cst_5 : f32 to vector<64x512xf32>
    %8 = arith.minimumf %6, %7 : vector<64x512xf32>
    %cst_6 = arith.constant 2.000000e+01 : f32
    %9 = vector.broadcast %cst_6 : f32 to vector<64x512xf32>
    %10 = arith.cmpf ogt, %6, %9 : vector<64x512xf32>
    %11 = math.exp %8 : vector<64x512xf32>
    %12 = math.log1p %11 : vector<64x512xf32>
    %13 = arith.select %10, %6, %12 : vector<64x512xi1>, vector<64x512xf32>
    %c0_7 = arith.constant 0 : index
    %c0_8 = arith.constant 0 : index
    %14 = vector.load %arg4[%c0_7, %c0_8] : memref<64x64xbf16, #tpu.memory_space<vmem>>, vector<64x64xbf16>
    %c0_9 = arith.constant 0 : index
    %c0_10 = arith.constant 0 : index
    %15 = vector.load %arg5[%c0_9, %c0_10] : memref<64x1xf32, #tpu.memory_space<vmem>>, vector<64x1xf32>
    %16 = arith.truncf %13 : vector<64x512xf32> to vector<64x512xbf16>
    %cst_11 = arith.constant dense<0.000000e+00> : vector<64x512xf32>
    %17 = tpu.matmul %14, %16, %cst_11 {dimension_numbers = #tpu.dot_dimension_numbers<[1], [0], [0], [1], [0, 0, 1, 1], [], []>} : vector<64x64xbf16>, vector<64x512xbf16>, vector<64x512xf32> -> vector<64x512xf32>
    %18 = vector.broadcast %15 : vector<64x1xf32> to vector<64x512xf32>
    %19 = arith.addf %17, %18 : vector<64x512xf32>
    %cst_12 = arith.constant 2.000000e+01 : f32
    %20 = vector.broadcast %cst_12 : f32 to vector<64x512xf32>
    %21 = arith.minimumf %19, %20 : vector<64x512xf32>
    %cst_13 = arith.constant 2.000000e+01 : f32
    %22 = vector.broadcast %cst_13 : f32 to vector<64x512xf32>
    %23 = arith.cmpf ogt, %19, %22 : vector<64x512xf32>
    %24 = math.exp %21 : vector<64x512xf32>
    %25 = math.log1p %24 : vector<64x512xf32>
    %26 = arith.select %23, %19, %25 : vector<64x512xi1>, vector<64x512xf32>
    %c0_14 = arith.constant 0 : index
    %c0_15 = arith.constant 0 : index
    %27 = vector.load %arg6[%c0_14, %c0_15] : memref<3x64xbf16, #tpu.memory_space<vmem>>, vector<3x64xbf16>
    %c0_16 = arith.constant 0 : index
    %c0_17 = arith.constant 0 : index
    %28 = vector.load %arg7[%c0_16, %c0_17] : memref<3x1xf32, #tpu.memory_space<vmem>>, vector<3x1xf32>
    %29 = arith.truncf %26 : vector<64x512xf32> to vector<64x512xbf16>
    %cst_18 = arith.constant dense<0.000000e+00> : vector<3x512xf32>
    %30 = tpu.matmul %27, %29, %cst_18 {dimension_numbers = #tpu.dot_dimension_numbers<[1], [0], [0], [1], [0, 0, 1, 1], [], []>} : vector<3x64xbf16>, vector<64x512xbf16>, vector<3x512xf32> -> vector<3x512xf32>
    %31 = vector.broadcast %28 : vector<3x1xf32> to vector<3x512xf32>
    %32 = arith.addf %30, %31 : vector<3x512xf32>
    %c0_19 = arith.constant 0 : index
    %c0_20 = arith.constant 0 : index
    %33 = vector.load %arg8[%c0_19, %c0_20] : memref<3x512xf32, #tpu.memory_space<vmem>>, vector<3x512xf32>
    tpu.vector_store %arg8[%c0_19, %c0_20], %32 {strides = array<i32>} : memref<3x512xf32, #tpu.memory_space<vmem>>, vector<3x512xf32>,
    return
  }
  func.func @transform_0(%arg0: i32) -> (i32, i32) {
    %c0_i32 = arith.constant 0 : i32
    %c0_i32_0 = arith.constant 0 : i32
    return %c0_i32, %arg0 : i32, i32
  }
  func.func @transform_1(%arg0: i32) -> (i32, i32) {
    %c0_i32 = arith.constant 0 : i32
    %c0_i32_0 = arith.constant 0 : i32
    %c0_i32_1 = arith.constant 0 : i32
    return %c0_i32, %c0_i32_0 : i32, i32
  }
  func.func @transform_2(%arg0: i32) -> (i32, i32) {
    %c0_i32 = arith.constant 0 : i32
    %c0_i32_0 = arith.constant 0 : i32
    %c0_i32_1 = arith.constant 0 : i32
    return %c0_i32, %c0_i32_0 : i32, i32
  }
  func.func @transform_3(%arg0: i32) -> (i32, i32) {
    %c0_i32 = arith.constant 0 : i32
    %c0_i32_0 = arith.constant 0 : i32
    %c0_i32_1 = arith.constant 0 : i32
    return %c0_i32, %c0_i32_0 : i32, i32
  }
  func.func @transform_4(%arg0: i32) -> (i32, i32) {
    %c0_i32 = arith.constant 0 : i32
    %c0_i32_0 = arith.constant 0 : i32
    %c0_i32_1 = arith.constant 0 : i32
    return %c0_i32, %c0_i32_0 : i32, i32
  }
  func.func @transform_5(%arg0: i32) -> (i32, i32) {
    %c0_i32 = arith.constant 0 : i32
    %c0_i32_0 = arith.constant 0 : i32
    %c0_i32_1 = arith.constant 0 : i32
    return %c0_i32, %c0_i32_0 : i32, i32
  }
  func.func @transform_6(%arg0: i32) -> (i32, i32) {
    %c0_i32 = arith.constant 0 : i32
    %c0_i32_0 = arith.constant 0 : i32
    %c0_i32_1 = arith.constant 0 : i32
    return %c0_i32, %c0_i32_0 : i32, i32
  }
  func.func @transform_7(%arg0: i32) -> (i32, i32) {
    %c0_i32 = arith.constant 0 : i32
    %c0_i32_0 = arith.constant 0 : i32
    return %c0_i32, %arg0 : i32, i32
  }
}

</mosaic_0001>

<bundles_post_ra>
// kernel: tpu_custom_call.1
= control target key start
LH: loop header
LB: loop body
LE: loop exit
PB: predicated region body
PF: predicated region fallthrough
CT: control target
= control target key end

     0   :  { %12 = vsyncpa [#allocation3], 0  ;;  %s3976_s0 = inlined_call_operand.vmem [shape: f32[6,2048], index: 0, kind: input, shape index: {}]   ;;  %s3977_s1 = inlined_call_operand.vmem [shape: bf16[64,6], index: 1, kind: input, shape index: {}]   ;;  %s3978_s2 = inlined_call_operand.vmem [shape: f32[64,1], index: 2, kind: input, shape index: {}]   ;;  %s3979_s3 = inlined_call_operand.vmem [shape: bf16[64,64], index: 3, kind: input, shape index: {}]   ;;  %s3980_s4 = inlined_call_operand.vmem [shape: f32[64,1], index: 4, kind: input, shape index: {}]   ;;  %s3981_s5 = inlined_call_operand.vmem [shape: bf16[3,64], index: 5, kind: input, shape index: {}]   ;;  %s3982_s6 = inlined_call_operand.vmem [shape: f32[3,1], index: 6, kind: input, shape index: {}]   ;;  %s3983_s7 = inlined_call_operand.hbm [shape: f32[3,2048], index: 7, kind: output, shape index: {}]  }
   0x1   :  { %14 = vsyncpa [#allocation3 + $0x1], 0  ;;  %s2327_s24 = smov 0   ;;  %s2329_s25 = smov 0  }
   0x2   :  { %s2331_s26 = smov 0   ;;  %s2333_s27 = smov 0  }
   0x3 LB: > { %s2348_s28 = sadd.s32 4294967295, %s2283_s27   ;;  %s1876_s29 = sadd.s32 4294967294, %s2283_s27   ;;  %s2283_s27 = sphi %s2333_s27, %s4358_s27   ;;  %s2279_s26 = sphi %s2331_s26, %s4357_s26   ;;  %s2275_s25 = sphi %s2329_s25, %s4356_s25   ;;  %s2271_s24 = sphi %s2327_s24, %s4355_s24  }
   0x4   : > { %s2352_s30 = sadd.s32 1, %s2283_s27   ;;  %s179_s8 = sadd.s32 1, %s2279_s26 }
   0x5   : > { %s176_s9 = ssub.s32 %s2283_s27, %s2352_s30  ;;  %p189_p0 = scmp.ne.s32.totalorder %s2279_s26, %s2275_s25 }
   0x6   : > { %p177_p1 = scmp.eq.s32.totalorder %s176_s9, 0  ;;  %p190_p2 = scmp.eq.s32.totalorder %s2348_s28, 3 }
   0x7   : > { %p195_p3 = scmp.ne.s32.totalorder %s2275_s25, %s2271_s24  ;;  %p196_p4 = scmp.eq.s32.totalorder %s1876_s29, 3 }
   0x8   : > { %s2363_s10 = scalar_select %p177_p1, %s2279_s26, %s179_s8  }
   0x9   : > { %p2365_p5 = por %p190_p2, %p189_p0  ;;  %p2369_p6 = por %p196_p4, %p195_p3 }
   0xa   : > { %p1879_p7 = scmp.ge.s32.totalorder %s2283_s27, 1  ;;  %p241_p8 = scmp.lt.s32.totalorder %s2283_s27, 5 }
   0xc   : > { %p242_p9 = pnand %p1879_p7, %p241_p8 }
   0xe   : > { %245 = sbr.rel (%p242_p9) target bundleno = 900 (0x384), region = 48 }
  0x13   : > { %s1881_s13 = sshll.u32 %s2348_s28, 2  ;;  %v3984_v0 = vmov 0   ;;  %v299_v1 = vld [vmem:[%s3978_s2 + $0x30] sm:$0xff]  ;;  %v297_v2 = vld [vmem:[%s3978_s2 + $0x20] sm:$0xff]  ;;  %vm378_vm0 = vcmask 1042432   ;;  %v300_v3 = vld [vmem:[%s3978_s2 + $0x38] sm:$0xff] }
  0x14   : > { %p274_p10 = scmp.lt.s32.totalorder %s1881_s13, 15  ;;  %423 = vmatprep.mubr.bf16.mxu0 %v3984_v0  ;;  %496 = vmatprep.mubr.bf16.mxu1 %v3984_v0  ;;  %v298_v11 = vld [vmem:[%s3978_s2 + $0x28] sm:$0xff]  ;;  %v1959_v14 = vld [vmem:[%s3977_s1] sm:$0xff]   ;;  %v295_v15 = vld [vmem:[%s3978_s2 + $0x10] sm:$0xff]  ;;  %vm365_vm1 = vcmask 48128   ;;  %s270_s14 = sand.u32 1, %s2275_s25  }
  0x15   : > { %1957 = vset.pattern.permute.xlu0 %v3984_v0  ;;  %1958 = vset.pattern.permute.xlu1 %v3984_v0  ;;  %v296_v17 = vld [vmem:[%s3978_s2 + $0x18] sm:$0xff]  ;;  %v293_v18 = vld [vmem:[%s3978_s2] sm:$0xff]  ;;  %v294_v19 = vld [vmem:[%s3978_s2 + $0x8] sm:$0xff]  ;;  %s1880_s15 = sshll.u32 %s270_s14, 4  ;;  %s1916_s17 = sshll.u32 %s2348_s28, 8 }
  0x16   : > { %s4360_s13 = smov (!%p274_p10, %s1881_s13), 15  ;;  %337 = vperm.xlu0 %1957, %v299_v1   ;;  %327 = vperm.xlu1 %1958, %v297_v2   ;;  %v1960_v20 = vld [vmem:[%s3977_s1 + $0x8] sm:$0xff]   ;;  %v999_v21 = vld [vmem:[%s3980_s4 + $0x30] sm:$0xff]  ;;  %v1000_v22 = vld [vmem:[%s3980_s4 + $0x38] sm:$0xff]  ;;  %s1803_s22 = scalar_lea.sflag [#allocation3], %s270_s14 }
  0x17   : > { %s1882_s16 = sshll.u32 %s4360_s13, 3  ;;  %v997_v23 = vld [vmem:[%s3980_s4 + $0x20] sm:$0xff]  ;;  %v998_v24 = vld [vmem:[%s3980_s4 + $0x28] sm:$0xff]  ;;  %v1961_v25 = vld [vmem:[%s3977_s1 + $0x10] sm:$0xff]   ;;  %s2286_s28 = smov [#allocation2]  }
  0x18   : > { %s277_s21 = scalar_lea.vmem %s3976_s0, %s1882_s16  ;;  %v995_v26 = vld [vmem:[%s3980_s4 + $0x10] sm:$0xff]  ;;  %v996_v27 = vld [vmem:[%s3980_s4 + $0x18] sm:$0xff]  ;;  %v993_v28 = vld [vmem:[%s3980_s4] sm:$0xff]  ;;  %s272_s16 = scalar_lea.vmem [#allocation2], %s1880_s15 }
  0x19   : > { %v282_v4 = vld [vmem:[%s277_s21 + $0x8] sm:$0x3f]  ;;  %v284_v5 = vld [vmem:[%s277_s21 + $0x18] sm:$0x3f]  ;;  %v281_v6 = vld [vmem:[%s277_s21] sm:$0x3f] }
  0x1a   : > { %v302_v7 = vpack.c.bf16 %v282_v4, %v282_v4  ;;  %v304_v8 = vpack.c.bf16 %v284_v5, %v284_v5  ;;  %v301_v9 = vpack.c.bf16 %v281_v6, %v281_v6  ;;  %v283_v10 = vld [vmem:[%s277_s21 + $0x10] sm:$0x3f]  ;;  %342 = vperm.xlu0 %1957, %v300_v3   ;;  %332 = vperm.xlu1 %1958, %v298_v11   ;;  %v994_v29 = vld [vmem:[%s3980_s4 + $0x8] sm:$0xff]  ;;  %v1962_v30 = vld [vmem:[%s3977_s1 + $0x18] sm:$0xff]   ;;  %s1817_s18 = sshll.u32 %s272_s16, 4  ;;  %s3941_s21 = scalar_lea.hbm %s3983_s7, %s1916_s17  ;;  %s1818_s18 = int_to_ptr.vmem [resolvable:$true] %s1817_s18 }
  0x1b   : > { %v303_v12 = vpack.c.bf16 %v283_v10, %v283_v10  ;;  %v1685_v31 = vld [vmem:[%s3982_s6] sm:$0x7]  ;;  %s2223_s23 = scalar_lea.vmem %s1818_s18, 256  ;;  %s2227_s29 = sshll.u32 %s2286_s28, 4  ;;  %s2228_s29 = int_to_ptr.vmem [resolvable:$false] %s2227_s29 }
  0x1c   : > { %1887 = vmatprep.subr.msk.bf16.mxu0 %vm378_vm0, %v302_v7  ;;  %1892 = vmatprep.subr.msk.bf16.mxu1 %vm378_vm0, %v304_v8  ;;  %v380_v13 = vsel %vm378_vm0, %v301_v9, 0  ;;  %p2224_p11 = scmp.ne.s32.totalorder %s1818_s18, %s2223_s23  ;;  %s2229_s8 = scalar_lea.vmem %s2228_s29, 512 }
  0x1d   : > { %406 = vmatpush1.bf16.msra.mxu0 %v380_v13  ;;  %v386_v16 = vsel %vm378_vm0, %v303_v12, 0  ;;  %p2230_p0 = scmp.lt.s32.totalorder %s1818_s18, %s2228_s29  ;;  %p2231_p1 = scmp.lt.s32.totalorder %s2229_s8, %s2223_s23 }
  0x1e   : > { %479 = vmatpush1.bf16.msra.mxu1 %v386_v16  ;;  %317 = vperm.xlu0 %1957, %v295_v15   ;;  %p2225_p12 = pnand %p2224_p11, %p2365_p5 }
  0x1f   : > { %322 = vperm.xlu1 %1958, %v296_v17   ;;  %p2232_p2 = por %p2231_p1, %p2230_p0 }
  0x20   : > { %1888 = vmatmul.mubr.msk.bf16.vlgmr.msra.gmra.mxu0 %vm365_vm1, %v1959_v14  ;;  %p2226_p13 = pneg %p2225_p12 }
  0x21   : > { %1893 = vmatmul.mubr.msk.bf16.vlgmr.msra.gmra.mxu1 %vm365_vm1, %v1959_v14  ;;  %433 = vmatprep.mubr.bf16.mxu0 %v3984_v0 }
  0x22   : > { %506 = vmatprep.mubr.bf16.mxu1 %v3984_v0  ;;  %307 = vperm.xlu0 %1957, %v293_v18   ;;  %p2233_p3 = pnand %p2232_p2, %p2226_p13 }
  0x23   : > { %312 = vperm.xlu1 %1958, %v294_v19  }
  0x26   : > { %1049 = vperm.xlu0 %1957, %v999_v21  }
  0x27   : > { %1054 = vperm.xlu1 %1958, %v1000_v22  }
  0x28   : > { %1889 = vmatmul.mubr.msk.bf16.gmra.mxu0 %vm365_vm1, %v1960_v20 }
  0x29   : > { %1894 = vmatmul.mubr.msk.bf16.gmra.mxu1 %vm365_vm1, %v1960_v20  ;;  %443 = vmatprep.mubr.bf16.mxu0 %v3984_v0 }
  0x2a   : > { %516 = vmatprep.mubr.bf16.mxu1 %v3984_v0  ;;  %1039 = vperm.xlu0 %1957, %v997_v23  }
  0x2b   : > { %1044 = vperm.xlu1 %1958, %v998_v24  }
  0x2e   : > { %1029 = vperm.xlu0 %1957, %v995_v26  }
  0x2f   : > { %1034 = vperm.xlu1 %1958, %v996_v27  }
  0x30   : > { %1890 = vmatmul.mubr.msk.bf16.gmra.mxu0 %vm365_vm1, %v1961_v25 }
  0x31   : > { %1895 = vmatmul.mubr.msk.bf16.gmra.mxu1 %vm365_vm1, %v1961_v25  ;;  %453 = vmatprep.mubr.bf16.mxu0 %v3984_v0 }
  0x32   : > { %526 = vmatprep.mubr.bf16.mxu1 %v3984_v0  ;;  %1019 = vperm.xlu0 %1957, %v993_v28  }
  0x33   : > { %1024 = vperm.xlu1 %1958, %v994_v29  }
  0x36   : > { %1704 = vperm.xlu0 %1957, %v1685_v31  }
  0x38   : > { %1891 = vmatmul.mubr.msk.bf16.gmra.mxu0 %vm365_vm1, %v1962_v30 }
  0x39   : > { %1896 = vmatmul.mubr.msk.bf16.gmra.mxu1 %vm365_vm1, %v1962_v30  ;;  %1122 = vmatprep.mubr.bf16.mxu0 %v3984_v0 }
  0x3a   : > { %1195 = vmatprep.mubr.bf16.mxu1 %v3984_v0 }
  0x91   : > { %v2466_v32 = vpop.permute.xlu0 %337  ;;  %v2468_v33 = vpop.permute.xlu1 %327 }
  0x95   : > { %v2470_v34 = vpop.permute.xlu0 %342  ;;  %v2472_v35 = vpop.permute.xlu1 %332 }
  0x99   : > { %v318_v39 = vpop.permute.xlu0 %317 }
  0x9a   : > { %v2474_v42 = vpop.permute.xlu1 %322 }
  0x9d   : > { %v308_v47 = vpop.permute.xlu0 %307 }
  0x9e   : > { %v313_v49 = vpop.permute.xlu1 %312 }
  0xe0   : > { %v425_v36 = vpop.f32.mrf.mxu0 }
  0xe1   : > { %v498_v37 = vpop.f32.mrf.mxu1  ;;  %v2476_v51 = vadd.f32 %v425_v36, %v308_v47 }
  0xe2   : > { %v427_v38 = vpop.f32.mrf.mxu0  ;;  %v2478_v52 = vadd.f32 %v498_v37, %v308_v47 }
  0xe3   : > { %v500_v40 = vpop.f32.mrf.mxu1  ;;  %4064 = vst [vmem:[#allocation5_spill] sm:$0xff] %v2476_v51  ;;  %v537_v56 = vmin.f32 %v2476_v51, 20.0  ;;  %v2496_v8 = vadd.f32 %v427_v38, %v308_v47 }
  0xe4   : > { %v429_v41 = vpop.f32.mrf.mxu0  ;;  %4065 = vst [vmem:[#allocation6_spill] sm:$0xff] %v2478_v52  ;;  %v539_v58 = vmin.f32 %v2478_v52, 20.0  ;;  %v2498_v10 = vadd.f32 %v500_v40, %v308_v47 }
  0xe5   : > { %v502_v43 = vpop.f32.mrf.mxu1  ;;  %v2480_v53 = vadd.f32 %v429_v41, %v313_v49  ;;  %v601_v63 = vmul.f32 1.442695, %v537_v56  ;;  %4069 = vst [vmem:[#allocation10_spill] sm:$0xff] %v2496_v8  ;;  %v538_v17 = vmin.f32 %v2496_v8, 20.0 }
  0xe6   : > { %v431_v44 = vpop.f32.mrf.mxu0  ;;  %v2486_v59 = vadd.f32 %v502_v43, %v313_v49  ;;  %v605_v2 = vmul.f32 1.442695, %v539_v58  ;;  %4070 = vst [vmem:[#allocation11_spill] sm:$0xff] %v2498_v10  ;;  %v540_v19 = vmin.f32 %v2498_v10, 20.0 }
  0xe7   : > { %v504_v45 = vpop.f32.mrf.mxu1  ;;  %4066 = vst [vmem:[#allocation7_spill] sm:$0xff] %v2480_v53  ;;  %v541_v60 = vmin.f32 %v2480_v53, 20.0  ;;  %1967 = vpow2.f32 %v601_v63  ;;  %v2504_v15 = vadd.f32 %v431_v44, %v313_v49  ;;  %v603_v28 = vmul.f32 1.442695, %v538_v17 }
  0xe8   : > { %v435_v46 = vpop.f32.mrf.mxu0  ;;  %4067 = vst [vmem:[#allocation8_spill] sm:$0xff] %v2486_v59  ;;  %v543_v3 = vmin.f32 %v2486_v59, 20.0  ;;  %1969 = vpow2.f32 %v605_v2  ;;  %v2509_v20 = vadd.f32 %v504_v45, %v313_v49  ;;  %v607_v30 = vmul.f32 1.442695, %v540_v19 }
  0xe9   : > { %v508_v50 = vpop.f32.mrf.mxu1  ;;  %v2483_v57 = vadd.f32 %v435_v46, %v318_v39  ;;  %v609_v5 = vmul.f32 1.442695, %v541_v60  ;;  %4071 = vst [vmem:[#allocation12_spill] sm:$0xff] %v2504_v15  ;;  %v542_v24 = vmin.f32 %v2504_v15, 20.0 }
  0xea   : > { %v437_v48 = vpop.f32.mrf.mxu0  ;;  %v2491_v4 = vadd.f32 %v508_v50, %v318_v39  ;;  %v613_v12 = vmul.f32 1.442695, %v543_v3  ;;  %4072 = vst [vmem:[#allocation13_spill] sm:$0xff] %v2509_v20  ;;  %v544_v31 = vmin.f32 %v2509_v20, 20.0 }
  0xeb   : > { %v510_v55 = vpop.f32.mrf.mxu1  ;;  %v545_v1 = vmin.f32 %v2483_v57, 20.0  ;;  %1971 = vpow2.f32 %v609_v5  ;;  %v2511_v22 = vadd.f32 %v437_v48, %v318_v39  ;;  %v611_v43 = vmul.f32 1.442695, %v542_v24 }
  0xec   : > { %v439_v54 = vpop.f32.mrf.mxu0  ;;  %4068 = vst [vmem:[#allocation9_spill] sm:$0xff] %v2491_v4  ;;  %v547_v13 = vmin.f32 %v2491_v4, 20.0  ;;  %v2521_v29 = vadd.f32 %v510_v55, %v318_v39  ;;  %v615_v46 = vmul.f32 1.442695, %v544_v31  ;;  %vm577_vm3 = vcmp.gt.f32.partialorder %v2483_v57, 20.0 }
  0xed   : > { %v512_v62 = vpop.f32.mrf.mxu1  ;;  %v2494_v6 = vadd.f32 %v439_v54, %v2474_v42  ;;  %v617_v11 = vmul.f32 1.442695, %v545_v1  ;;  %v546_v37 = vmin.f32 %v2511_v22, 20.0 }
  0xee   : > { %v441_v61 = vpop.f32.mrf.mxu0  ;;  %v621_v21 = vmul.f32 1.442695, %v547_v13  ;;  %v2516_v26 = vadd.f32 %v512_v62, %v2474_v42  ;;  %4074 = vst [vmem:[#allocation15_spill] sm:$0xff] %v2521_v29  ;;  %v548_v39 = vmin.f32 %v2521_v29, 20.0 }
  0xef   : > { %v514_v9 = vpop.f32.mrf.mxu1  ;;  %v549_v16 = vmin.f32 %v2494_v6, 20.0  ;;  %1973 = vpow2.f32 %v617_v11  ;;  %v619_v49 = vmul.f32 1.442695, %v546_v37  ;;  %v2535_v56 = vadd.f32 %v441_v61, %v2474_v42 }
  0xf0   : > { %v445_v7 = vpop.f32.mrf.mxu0  ;;  %1975 = vpow2.f32 %v613_v12  ;;  %4073 = vst [vmem:[#allocation14_spill] sm:$0xff] %v2516_v26  ;;  %v551_v44 = vmin.f32 %v2516_v26, 20.0  ;;  %v623_v60 = vmul.f32 1.442695, %v548_v39  ;;  %v2544_v1 = vadd.f32 %v514_v9, %v2474_v42 }
  0xf1   : > { %v2502_v14 = vadd.f32 %v445_v7, %v2468_v33  ;;  %v518_v18 = vpop.f32.mrf.mxu1  ;;  %v625_v25 = vmul.f32 1.442695, %v549_v16  ;;  %1977 = vpow2.f32 %v621_v21  ;;  %v550_v12 = vmin.f32 %v2535_v56, 20.0 }
  0xf2   : > { %v2519_v27 = vadd.f32 %v518_v18, %v2468_v33  ;;  %v447_v36 = vpop.f32.mrf.mxu0  ;;  %v629_v55 = vmul.f32 1.442695, %v551_v44  ;;  %4078 = vst [vmem:[#allocation19_spill] sm:$0xff] %v2544_v1  ;;  %v552_v18 = vmin.f32 %v2544_v1, 20.0 }
  0xf3   : > { %v553_v23 = vmin.f32 %v2502_v14, 20.0  ;;  %v2526_v41 = vpop.f32.mrf.mxu1  ;;  %1979 = vpow2.f32 %v625_v25  ;;  %v2560_v13 = vadd.f32 %v447_v36, %v2468_v33  ;;  %vm585_vm6 = vcmp.gt.f32.partialorder %v2502_v14, 20.0 }
  0xf4   : > { %v555_v40 = vmin.f32 %v2519_v27, 20.0  ;;  %1981 = vpow2.f32 %v603_v28  ;;  %v449_v47 = vpop.f32.mrf.mxu0  ;;  %v2530_v48 = vpop.eup %1967  ;;  %vm587_vm7 = vcmp.gt.f32.partialorder %v2519_v27, 20.0 }
  0xf5   : > { %v633_v38 = vmul.f32 1.442695, %v553_v23  ;;  %1983 = vpow2.f32 %v607_v30  ;;  %4075 = vst [vmem:[#allocation16_spill] sm:$0xff] %v2530_v48  ;;  %v522_v50 = vpop.f32.mrf.mxu1  ;;  %v2532_v54 = vpop.eup %1969  ;;  %v2540_v62 = vadd.f32 %v449_v47, %v2472_v35  ;;  %v665_v63 = vadd.f32 1.0, %v2530_v48 }
  0xf6   : > { %v637_v45 = vmul.f32 1.442695, %v555_v40  ;;  %4076 = vst [vmem:[#allocation17_spill] sm:$0xff] %v2532_v54  ;;  %v2547_v2 = vadd.f32 %v522_v50, %v2472_v35  ;;  %v668_v61 = vmul.f32 -0.5, %v2530_v48  ;;  %v683_v5 = vadd.f32 1.0, %v2532_v54  ;;  %v451_v25 = vpop.f32.mrf.mxu0 }
  0xf7   : > { %1985 = vpow2.f32 %v633_v38  ;;  %v557_v42 = vmin.f32 %v2540_v62, 20.0  ;;  %v686_v9 = vmul.f32 -0.5, %v2532_v54  ;;  %v2572_v37 = vpop.f32.mrf.mxu1  ;;  %v627_v40 = vmul.f32 1.442695, %v550_v12 }
  0xf8   : > { %1987 = vpow2.f32 %v611_v43  ;;  %v2537_v58 = vpop.eup %1971  ;;  %v559_v16 = vmin.f32 %v2547_v2, 20.0  ;;  %v669_v21 = vadd.f32 1.0, %v668_v61  ;;  %v554_v43 = vmin.f32 %v2560_v13, 20.0 }
  0xf9   : > { %4077 = vst [vmem:[#allocation18_spill] sm:$0xff] %v2537_v58  ;;  %1989 = vpow2.f32 %v637_v45  ;;  %v701_v11 = vadd.f32 1.0, %v2537_v58  ;;  %v641_v19 = vmul.f32 1.442695, %v557_v42  ;;  %v704_v23 = vmul.f32 -0.5, %v2537_v58  ;;  %v528_v42 = vpop.f32.mrf.mxu1 }
  0xfa   : > { %1991 = vpow2.f32 %v615_v46  ;;  %v645_v44 = vmul.f32 1.442695, %v559_v16  ;;  %v687_v45 = vadd.f32 1.0, %v686_v9  ;;  %v631_v46 = vmul.f32 1.442695, %v552_v18 }
  0xfb   : > { %1993 = vpow2.f32 %v619_v49  ;;  %v2580_v47 = vadd.f32 %v451_v25, %v2472_v35  ;;  %v2585_v50 = vmul.f32 %v2530_v48, %v669_v21  ;;  %v635_v18 = vmul.f32 1.442695, %v554_v43  ;;  %v530_v31 = vpop.f32.mrf.mxu1 }
  0xfc   : > { %v2549_v3 = vpop.eup %1973  ;;  %1995 = vpow2.f32 %v629_v55  ;;  %v705_v55 = vadd.f32 1.0, %v704_v23  ;;  %v2599_v21 = vmul.f32 %v2532_v54, %v687_v45  ;;  %v2637_v20 = vadd.f32 %v530_v31, %v2466_v32 }
  0xfd   : > { %v2553_v7 = vpop.eup %1975  ;;  %1997 = vpow2.f32 %v623_v60  ;;  %v737_v17 = vadd.f32 1.0, %v2549_v3  ;;  %4082 = vst [vmem:[#allocation23_spill] sm:$0xff] %v2585_v50  ;;  %v558_v12 = vmin.f32 %v2580_v47, 20.0  ;;  %vm589_vm9 = vcmp.gt.f32.partialorder %v2540_v62, 20.0 }
  0xfe   : > { %4079 = vst [vmem:[#allocation20_spill] sm:$0xff] %v2553_v7  ;;  %1999 = vlog2.f32 %v665_v63  ;;  %v719_v24 = vadd.f32 1.0, %v2553_v7  ;;  %v2567_v28 = vpop.eup %1977  ;;  %v722_v36 = vmul.f32 -0.5, %v2553_v7  ;;  %v455_v63 = vpop.f32.mrf.mxu0  ;;  %4084 = vst [vmem:[#allocation25_spill] sm:$0xff] %v2599_v21  ;;  %vm591_vm12 = vcmp.gt.f32.partialorder %v2547_v2, 20.0 }
  0xff   : > { %2001 = vlog2.f32 %v683_v5  ;;  %4080 = vst [vmem:[#allocation21_spill] sm:$0xff] %v2567_v28  ;;  %v755_v60 = vadd.f32 1.0, %v2567_v28  ;;  %v758_v23 = vmul.f32 -0.5, %v2567_v28  ;;  %vm586_vm1 = vcmp.gt.f32.partialorder %v2560_v13, 20.0 }
 0x100   : > { %2003 = vlog2.f32 %v701_v11  ;;  %v2574_v38 = vpop.eup %1979  ;;  %v723_v5 = vadd.f32 1.0, %v722_v36  ;;  %v2608_v36 = vmul.f32 %v2537_v58, %v705_v55  ;;  %v457_v0 = vpop.f32.mrf.mxu0 }
 0x101   : > { %2005 = vpow2.f32 %v641_v19  ;;  %v2577_v39 = vpop.eup %1981  ;;  %v773_v11 = vadd.f32 1.0, %v2574_v38  ;;  %v776_v52 = vmul.f32 -0.5, %v2574_v38 }
 0x102   : > { %2007 = vlog2.f32 %v737_v17  ;;  %v2582_v49 = vpop.eup %1983  ;;  %v740_v17 = vmul.f32 -0.5, %v2549_v3  ;;  %4086 = vst [vmem:[#allocation27_spill] sm:$0xff] %v2608_v36  ;;  %v2615_v45 = vmul.f32 %v2553_v7, %v723_v5  ;;  %v759_v5 = vadd.f32 1.0, %v758_v23  ;;  %v459_v10 = vpop.f32.mrf.mxu0 }
 0x103   : > { %4081 = vst [vmem:[#allocation22_spill] sm:$0xff] %v2582_v49  ;;  %2009 = vlog2.f32 %v719_v24  ;;  %v2603_v24 = vadd.f32 %v455_v63, %v2466_v32  ;;  %v643_v63 = vmul.f32 1.442695, %v558_v12  ;;  %v2631_v12 = vadd.f32 %v528_v42, %v2466_v32 }
 0x104   : > { %v2588_v61 = vpop.eup %1985  ;;  %2011 = vpow2.f32 %v645_v44  ;;  %4087 = vst [vmem:[#allocation28_spill] sm:$0xff] %v2615_v45  ;;  %v741_v30 = vadd.f32 1.0, %v740_v17  ;;  %v2634_v17 = vadd.f32 %v457_v0, %v2466_v32  ;;  %v2655_v45 = vmul.f32 %v2567_v28, %v759_v5  ;;  %v461_v51 = vpop.f32.mrf.mxu0 }
 0x105   : > { %v2592_v9 = vpop.eup %1987  ;;  %2013 = vpow2.f32 %v627_v40  ;;  %v809_v40 = vadd.f32 1.0, %v2588_v61  ;;  %v563_v0 = vmin.f32 %v2631_v12, 20.0  ;;  %v779_v7 = vand.u32 2147483647, %v2574_v38 }
 0x106   : > { %4083 = vst [vmem:[#allocation24_spill] sm:$0xff] %v2592_v9  ;;  %v2596_v19 = vpop.eup %1989  ;;  %2015 = vpow2.f32 %v631_v46  ;;  %v2619_v46 = vadd.f32 %v2526_v41, %v2468_v33  ;;  %v561_v33 = vmin.f32 %v2603_v24, 20.0  ;;  %v562_v32 = vmin.f32 %v2634_v17, 20.0  ;;  %4091 = vst [vmem:[#allocation30_spill] sm:$0xff] %v2655_v45 }
 0x107   : > { %v2605_v25 = vpop.eup %1991  ;;  %2017 = vlog2.f32 %v755_v60  ;;  %v743_v60 = vand.u32 2147483647, %v2549_v3  ;;  %v827_v44 = vadd.f32 1.0, %v2596_v19  ;;  %v653_v54 = vmul.f32 1.442695, %v563_v0 }
 0x108   : > { %4085 = vst [vmem:[#allocation26_spill] sm:$0xff] %v2605_v25  ;;  %v2612_v43 = vpop.eup %1993  ;;  %2019 = vlog2.f32 %v773_v11  ;;  %v556_v11 = vmin.f32 %v2619_v46, 20.0  ;;  %v649_v59 = vmul.f32 1.442695, %v561_v33  ;;  %v777_v33 = vadd.f32 1.0, %v776_v52 }
 0x109   : > { %v2621_v55 = vpop.eup %1995  ;;  %2021 = vpow2.f32 %v635_v18  ;;  %vm2646_vm2 = vcmp.lt.f32.partialorder %v743_v60, 0.0004427343  ;;  %v651_v36 = vmul.f32 1.442695, %v562_v32  ;;  %v2684_v32 = vadd.f32 %v461_v51, %v2470_v34 }
 0x10a   : > { %v2625_v16 = vpop.eup %1997  ;;  %2023 = vlog2.f32 %v809_v40  ;;  %v791_v23 = vadd.f32 1.0, %v2621_v55  ;;  %v2644_v40 = vmul.f32 %v2549_v3, %v741_v30  ;;  %v564_v3 = vmin.f32 %v2637_v20, 20.0  ;;  %v532_v30 = vpop.f32.mrf.mxu1 }
 0x10b   : > { %v2000_v41 = vpop.eup %1999  ;;  %2025 = vpow2.f32 %v643_v63  ;;  %v794_v63 = vmul.f32 -0.5, %v2621_v55  ;;  %v639_v5 = vmul.f32 1.442695, %v556_v11  ;;  %v2672_v15 = vadd.f32 %v532_v30, %v2470_v34 }
 0x10c   : > { %v2639_v18 = vpop.eup %2001  ;;  %2027 = vlog2.f32 %v827_v44  ;;  %v2668_v45 = vmul.f32 0.6931472, %v2000_v41  ;;  %v655_v52 = vmul.f32 1.442695, %v564_v3  ;;  %v812_v11 = vmul.f32 -0.5, %v2588_v61 }
 0x10d   : > { %4088 = vst [vmem:[#allocation29_spill] sm:$0xff] %v2639_v18  ;;  %v2004_v21 = vpop.eup %2003  ;;  %2029 = vpow2.f32 %v649_v59  ;;  %v2662_v18 = vadd.f32 %v459_v10, %v2470_v34  ;;  %v2680_v0 = vmul.f32 %v2574_v38, %v777_v33  ;;  %vm2688_vm4 = vcmp.lt.f32.partialorder %v779_v7, 0.0004427343 }
 0x10e   : > { %v2652_v31 = vpop.eup %2005  ;;  %2031 = vlog2.f32 %v791_v23  ;;  %4093 = vst [vmem:[#allocation32_spill] sm:$0xff] %v2668_v45  ;;  %v2686_v30 = vmul.f32 0.6931472, %v2004_v21  ;;  %v567_v33 = vmin.f32 %v2672_v15, 20.0  ;;  %v534_v21 = vpop.f32.mrf.mxu1  ;;  %v815_v45 = vand.u32 2147483647, %v2588_v61 }
 0x10f   : > { %v2008_v60 = vpop.eup %2007  ;;  %v845_v44 = vadd.f32 1.0, %v2652_v31  ;;  %4094 = vst [vmem:[#allocation33_spill] sm:$0xff] %v2680_v0  ;;  %v565_v41 = vmin.f32 %v2662_v18, 20.0  ;;  %vm593_vm0 = vcmp.gt.f32.partialorder %v2603_v24, 20.0 }
 0x110   : > { %v2664_v50 = vpop.eup %2009  ;;  %v739_v8 = vmul.f32 0.6931472, %v2008_v60  ;;  %4095 = vst [vmem:[#allocation34_spill] sm:$0xff] %v2686_v30  ;;  %v4096_v60 = vmov 0  ;;  %vm2726_vm5 = vcmp.lt.f32.partialorder %v815_v45, 0.0004427343 }
 0x111   : > { %4092 = vst [vmem:[#allocation31_spill] sm:$0xff] %v2664_v50  ;;  %v2666_v59 = vpop.eup %2011  ;;  %2033 = vlog2.f32 %v845_v44  ;;  %v795_v50 = vadd.f32 1.0, %v794_v63  ;;  %v4097_v60 = vsel %vm2688_vm4, 4294967295, %v4096_v60  ;;  %v657_v51 = vmul.f32 1.442695, %v565_v41 }
 0x112   : > { %v2674_v10 = vpop.eup %2013  ;;  %2035 = vpow2.f32 %v653_v54  ;;  %4098 = vst [vmem:[#allocation35_spill] sm:$0xff] %v4097_v60  ;;  %v863_v63 = vadd.f32 1.0, %v2666_v59  ;;  %v745_v7 = vsel %vm2646_vm2, %v2644_v40, %v739_v8  ;;  %v813_v54 = vadd.f32 1.0, %v812_v11 }
 0x113   : > { %v2677_v23 = vpop.eup %2015  ;;  %2037 = vpow2.f32 %v651_v36  ;;  %v2696_v36 = vadd.f32 %v2572_v37, %v2472_v35  ;;  %v830_v35 = vmul.f32 -0.5, %v2596_v19  ;;  %v661_v37 = vmul.f32 1.442695, %v567_v33 }
 0x114   : > { %v2018_v3 = vpop.eup %2017  ;;  %2039 = vpow2.f32 %v639_v5  ;;  %v2705_v5 = vmul.f32 %v2621_v55, %v795_v50  ;;  %v2715_v8 = vadd.f32 %v534_v21, %v2470_v34  ;;  %v833_v34 = vand.u32 2147483647, %v2596_v19 }
 0x115   : > { %v2020_v38 = vpop.eup %2019  ;;  %2041 = vpow2.f32 %v655_v52  ;;  %v566_v52 = vmin.f32 %v2684_v32, 20.0  ;;  %v2710_v30 = vmul.f32 0.6931472, %v2018_v3  ;;  %v560_v40 = vmin.f32 %v2696_v36, 20.0 }
 0x116   : > { %v2699_v44 = vpop.eup %2021  ;;  %4099 = vst [vmem:[#allocation36_spill] sm:$0xff] %v2705_v5  ;;  %2043 = vpow2.f32 %v657_v51  ;;  %v2712_v53 = vmul.f32 0.6931472, %v2020_v38  ;;  %v2724_v3 = vsel %vm577_vm3, %v2483_v57, %v745_v7  ;;  %v814_v21 = vmul.f32 %v2588_v61, %v813_v54 }
 0x117   : > { %v2024_v41 = vpop.eup %2023  ;;  %4100 = vst [vmem:[#allocation37_spill] sm:$0xff] %v2710_v30  ;;  %2045 = vlog2.f32 %v863_v63  ;;  %v659_v42 = vmul.f32 1.442695, %v566_v52  ;;  %v818_v11 = vadd.f32 1.0, %v2699_v44  ;;  %4102 = vst [vmem:[#allocation39_spill] sm:$0xff] %v2724_v3  ;;  %v568_v63 = vmin.f32 %v2715_v8, 20.0 }
 0x118   : > { %4101 = vst [vmem:[#allocation38_spill] sm:$0xff] %v2712_v53  ;;  %v2717_v50 = vpop.eup %2025  ;;  %2047 = vpow2.f32 %v661_v37  ;;  %v831_v37 = vadd.f32 1.0, %v830_v35  ;;  %v848_v52 = vmul.f32 -0.5, %v2652_v31  ;;  %v866_v57 = vmul.f32 -0.5, %v2666_v59 }
 0x119   : > { %v2028_v51 = vpop.eup %2027  ;;  %2049 = vpow2.f32 %v659_v42  ;;  %v663_v7 = vmul.f32 1.442695, %v568_v63  ;;  %v854_v30 = vadd.f32 1.0, %v2717_v50  ;;  %v811_v61 = vmul.f32 0.6931472, %v2024_v41 }
 0x11a   : > { %v2732_v33 = vpop.eup %2029  ;;  %v647_v54 = vmul.f32 1.442695, %v560_v40  ;;  %2051 = vlog2.f32 %v818_v11  ;;  %v829_v42 = vmul.f32 0.6931472, %v2028_v51  ;;  %vm2745_vm8 = vcmp.lt.f32.partialorder %v833_v34, 0.0004427343 }
 0x11b   : > { %v881_v45 = vadd.f32 1.0, %v2732_v33  ;;  %v2032_v5 = vpop.eup %2031  ;;  %v821_v63 = vmul.f32 -0.5, %v2699_v44  ;;  %v832_v1 = vmul.f32 %v2596_v19, %v831_v37  ;;  %v849_v29 = vadd.f32 1.0, %v848_v52 }
 0x11c   : > { %v851_v60 = vand.u32 2147483647, %v2652_v31  ;;  %v867_v40 = vadd.f32 1.0, %v866_v57  ;;  %v869_v11 = vand.u32 2147483647, %v2666_v59  ;;  %v817_v19 = vsel %vm2726_vm5, %v814_v21, %v811_v61 }
 0x11d   : > { %2053 = vlog2.f32 %v881_v45  ;;  %v2761_v45 = vmul.f32 0.6931472, %v2032_v5  ;;  %v835_v57 = vsel %vm2745_vm8, %v832_v1, %v829_v42  ;;  %v822_v3 = vadd.f32 1.0, %v821_v63 }
 0x11e   : > { %v2034_v35 = vpop.eup %2033  ;;  %2055 = vpow2.f32 %v663_v7  ;;  %v857_v53 = vmul.f32 -0.5, %v2717_v50  ;;  %vm2772_vm10 = vcmp.lt.f32.partialorder %v851_v60, 0.0004427343  ;;  %v884_v38 = vmul.f32 -0.5, %v2732_v33 }
 0x11f   : > { %v2750_v25 = vpop.eup %2035  ;;  %2057 = vlog2.f32 %v854_v30  ;;  %4107 = vst [vmem:[#allocation40_spill] sm:$0xff] %v2761_v45  ;;  %v847_v7 = vmul.f32 0.6931472, %v2034_v35  ;;  %v850_v30 = vmul.f32 %v2652_v31, %v849_v29  ;;  %v2782_v48 = vsel %vm585_vm6, %v2502_v14, %v817_v19 }
 0x120   : > { %v2754_v41 = vpop.eup %2037  ;;  %v899_v51 = vadd.f32 1.0, %v2750_v25  ;;  %2059 = vpow2.f32 %v647_v54  ;;  %4110 = vst [vmem:[#allocation41_spill] sm:$0xff] %v2782_v48  ;;  %v2785_v1 = vmul.f32 %v2666_v59, %v867_v40  ;;  %vm2787_vm11 = vcmp.lt.f32.partialorder %v869_v11, 0.0004427343 }
 0x121   : > { %v2759_v34 = vpop.eup %2039  ;;  %v890_v37 = vadd.f32 1.0, %v2754_v41  ;;  %v2795_v60 = vsel %vm587_vm7, %v2519_v27, %v835_v57  ;;  %v824_v14 = vand.u32 2147483647, %v2699_v44  ;;  %v853_v59 = vsel %vm2772_vm10, %v850_v30, %v847_v7 }
 0x122   : > { %v2766_v52 = vpop.eup %2041  ;;  %2061 = vlog2.f32 %v899_v51  ;;  %4113 = vst [vmem:[#allocation42_spill] sm:$0xff] %v2795_v60  ;;  %v887_v42 = vand.u32 2147483647, %v2732_v33  ;;  %v2805_v63 = vmul.f32 %v2699_v44, %v822_v3  ;;  %v858_v40 = vadd.f32 1.0, %v857_v53 }
 0x123   : > { %v2777_v21 = vpop.eup %2043  ;;  %v908_v29 = vadd.f32 1.0, %v2766_v52  ;;  %2063 = vlog2.f32 %v890_v37  ;;  %v885_v11 = vadd.f32 1.0, %v884_v38  ;;  %v860_v51 = vand.u32 2147483647, %v2717_v50 }
 0x124   : > { %v2046_v31 = vpop.eup %2045  ;;  %v917_v54 = vadd.f32 1.0, %v2777_v21  ;;  %v902_v57 = vmul.f32 -0.5, %v2750_v25  ;;  %v893_v7 = vmul.f32 -0.5, %v2754_v41  ;;  %v2817_v53 = vsel %vm589_vm9, %v2540_v62, %v853_v59 }
 0x125   : > { %v2799_v35 = vpop.eup %2047  ;;  %v865_v37 = vmul.f32 0.6931472, %v2046_v31  ;;  %4114 = vst [vmem:[#allocation43_spill] sm:$0xff] %v2817_v53  ;;  %v920_v44 = vmul.f32 -0.5, %v2777_v21  ;;  %vm2821_vm13 = vcmp.lt.f32.partialorder %v887_v42, 0.0004427343  ;;  %v2832_v59 = vmul.f32 %v2732_v33, %v885_v11 }
 0x126   : > { %2065 = vlog2.f32 %v917_v54  ;;  %v935_v27 = vadd.f32 1.0, %v2799_v35  ;;  %v2809_v19 = vpop.eup %2049  ;;  %v905_v38 = vand.u32 2147483647, %v2750_v25  ;;  %v911_v31 = vmul.f32 -0.5, %v2766_v52 }
 0x127   : > { %2067 = vlog2.f32 %v908_v29  ;;  %v926_v3 = vadd.f32 1.0, %v2809_v19  ;;  %v2052_v30 = vpop.eup %2051  ;;  %v2828_v29 = vmul.f32 %v2717_v50, %v858_v40  ;;  %v836_v62 = vadd.f32 1.0, %v2759_v34 }
 0x128   : > { %2069 = vlog2.f32 %v935_v27  ;;  %v938_v27 = vmul.f32 -0.5, %v2799_v35  ;;  %v896_v42 = vand.u32 2147483647, %v2754_v41  ;;  %vm2836_vm14 = vcmp.lt.f32.partialorder %v824_v14, 0.0004427343 }
 0x129   : > { %2071 = vlog2.f32 %v926_v3  ;;  %vm2840_vm15 = vcmp.lt.f32.partialorder %v860_v51, 0.0004427343  ;;  %v871_v33 = vsel %vm2787_vm11, %v2785_v1, %v865_v37  ;;  %v903_v11 = vadd.f32 1.0, %v902_v57 }
 0x12a   : > { %v2054_v54 = vpop.eup %2053  ;;  %v894_v4 = vadd.f32 1.0, %v893_v7  ;;  %v921_v14 = vadd.f32 1.0, %v920_v44  ;;  %v923_v51 = vand.u32 2147483647, %v2777_v21  ;;  %v929_v26 = vmul.f32 -0.5, %v2809_v19 }
 0x12b   : > { %v2844_v50 = vpop.eup %2055  ;;  %vm590_vm2 = vcmp.gt.f32.partialorder %v2580_v47, 20.0  ;;  %vm2859_vm3 = vcmp.lt.f32.partialorder %v905_v38, 0.0004427343  ;;  %v941_v61 = vand.u32 2147483647, %v2799_v35  ;;  %v912_v37 = vadd.f32 1.0, %v911_v31 }
 0x12c   : > { %v2058_v3 = vpop.eup %2057  ;;  %v944_v58 = vadd.f32 1.0, %v2844_v50  ;;  %v914_v57 = vand.u32 2147483647, %v2766_v52  ;;  %2073 = vlog2.f32 %v836_v62  ;;  %v883_v7 = vmul.f32 0.6931472, %v2054_v54 }
 0x12d   : > { %v2855_v49 = vpop.eup %2059  ;;  %v939_v44 = vadd.f32 1.0, %v938_v27  ;;  %v947_v40 = vmul.f32 -0.5, %v2844_v50  ;;  %v904_v53 = vmul.f32 %v2750_v25, %v903_v11  ;;  %vm2867_vm5 = vcmp.lt.f32.partialorder %v896_v42, 0.0004427343 }
 0x12e   : > { %2075 = vlog2.f32 %v944_v58  ;;  %v932_v38 = vand.u32 2147483647, %v2809_v19  ;;  %v820_v28 = vmul.f32 0.6931472, %v2052_v30  ;;  %v856_v9 = vmul.f32 0.6931472, %v2058_v3 }
 0x12f   : > { %v2062_v48 = vpop.eup %2061  ;;  %v2875_v31 = vsel %vm591_vm12, %v2547_v2, %v871_v33  ;;  %vm595_vm6 = vcmp.gt.f32.partialorder %v2631_v12, 20.0  ;;  %vm2878_vm7 = vcmp.lt.f32.partialorder %v923_v51, 0.0004427343  ;;  %v895_v25 = vmul.f32 %v2754_v41, %v894_v4 }
 0x130   : > { %v930_v62 = vadd.f32 1.0, %v929_v26  ;;  %v2064_v54 = vpop.eup %2063  ;;  %v922_v30 = vmul.f32 %v2777_v21, %v921_v14  ;;  %v2886_v27 = vmul.f32 %v2766_v52, %v912_v37  ;;  %v950_v2 = vand.u32 2147483647, %v2844_v50 }
 0x131   : > { %v872_v42 = vadd.f32 1.0, %v2855_v49  ;;  %v889_v33 = vsel %vm2821_vm13, %v2832_v59, %v883_v7  ;;  %v901_v11 = vmul.f32 0.6931472, %v2062_v48  ;;  %vm594_vm9 = vcmp.gt.f32.partialorder %v2634_v17, 20.0 }
 0x132   : > { %v940_v4 = vmul.f32 %v2799_v35, %v939_v44  ;;  %vm2895_vm10 = vcmp.lt.f32.partialorder %v941_v61, 0.0004427343  ;;  %v948_v41 = vadd.f32 1.0, %v947_v40  ;;  %vm2900_vm12 = vcmp.lt.f32.partialorder %v932_v38, 0.0004427343 }
 0x133   : > { %v2066_v52 = vpop.eup %2065  ;;  %vm2904_vm8 = vcmp.lt.f32.partialorder %v914_v57, 0.0004427343  ;;  %v826_v48 = vsel %vm2836_vm14, %v2805_v63, %v820_v28  ;;  %v862_v35 = vsel %vm2840_vm15, %v2828_v29, %v856_v9  ;;  %2077 = vlog2.f32 %v872_v42 }
 0x134   : > { %v2068_v59 = vpop.eup %2067  ;;  %v919_v40 = vmul.f32 0.6931472, %v2066_v52  ;;  %v892_v3 = vmul.f32 0.6931472, %v2064_v54  ;;  %v931_v14 = vmul.f32 %v2809_v19, %v930_v62  ;;  %v746_v51 = vadd.f32 1.0, %v2612_v43 }
 0x135   : > { %v2070_v61 = vpop.eup %2069  ;;  %v977_v37 = vsel %vm593_vm0, %v2603_v24, %v889_v33  ;;  %vm599_vm13 = vcmp.gt.f32.partialorder %v2672_v15, 20.0  ;;  %vm2920_vm14 = vcmp.lt.f32.partialorder %v950_v2, 0.0004427343  ;;  %v839_v9 = vmul.f32 -0.5, %v2759_v34 }
 0x136   : > { %v782_v0 = vadd.f32 1.0, %v2674_v10  ;;  %v907_v45 = vsel %vm2859_vm3, %v904_v53, %v901_v11  ;;  %vm596_vm15 = vcmp.gt.f32.partialorder %v2637_v20, 20.0  ;;  %vm600_vm11 = vcmp.gt.f32.partialorder %v2715_v8, 20.0  ;;  %v2072_v29 = vpop.eup %2071 }
 0x137   : > { %v949_v63 = vmul.f32 %v2844_v50, %v948_v41  ;;  %v970_v24 = vsel %vm586_vm1, %v2560_v13, %v826_v48  ;;  %v974_v19 = vsel %vm590_vm2, %v2580_v47, %v862_v35  ;;  %v925_v57 = vsel %vm2878_vm7, %v922_v30, %v919_v40  ;;  %v4167_v35 = vld [vmem:[#allocation38_spill] sm:$0xff] }
 0x138   : > { %v937_v1 = vmul.f32 0.6931472, %v2070_v61  ;;  %v875_v53 = vmul.f32 -0.5, %v2855_v49  ;;  %2079 = vlog2.f32 %v746_v51  ;;  %v898_v7 = vsel %vm2867_vm5, %v895_v25, %v892_v3 }
 0x139   : > { %v928_v50 = vmul.f32 0.6931472, %v2072_v29  ;;  %v910_v44 = vmul.f32 0.6931472, %v2068_v59  ;;  %2081 = vlog2.f32 %v782_v0  ;;  %v979_v13 = vsel %vm595_vm6, %v2631_v12, %v907_v45  ;;  %v2074_v58 = vpop.eup %2073  ;;  %v4144_v45 = vld [vmem:[#allocation24_spill] sm:$0xff] }
 0x13a   : > { %v1010_v38 = vpack.c.bf16 %v974_v19, %v970_v24  ;;  %v840_v47 = vadd.f32 1.0, %v839_v9  ;;  %v842_v62 = vand.u32 2147483647, %v2759_v34  ;;  %vm4135_vm0 = vcmp.gt.f32.partialorder %v2662_v18, 20.0  ;;  %v4145_v24 = vld [vmem:[#allocation21_spill] sm:$0xff] }
 0x13b   : > { %v981_v54 = vsel %vm4135_vm0, %v2662_v18, %v925_v57  ;;  %v934_v60 = vsel %vm2900_vm12, %v931_v14, %v928_v50  ;;  %v878_v25 = vand.u32 2147483647, %v2855_v49  ;;  %v764_v30 = vadd.f32 1.0, %v2625_v16  ;;  %v2076_v2 = vpop.eup %2075  ;;  %v4149_v57 = vld [vmem:[#allocation42_spill] sm:$0xff] }
 0x13c   : > { %vm588_vm1 = vcmp.gt.f32.partialorder %v2619_v46, 20.0  ;;  %vm592_vm2 = vcmp.gt.f32.partialorder %v2696_v36, 20.0  ;;  %v943_v12 = vsel %vm2895_vm10, %v940_v4, %v937_v1  ;;  %v978_v42 = vsel %vm594_vm9, %v2634_v17, %v898_v7  ;;  %v4151_v7 = vld [vmem:[#allocation41_spill] sm:$0xff] }
 0x13d   : > { %vm4136_vm3 = vcmp.gt.f32.partialorder %v2684_v32, 20.0  ;;  %v876_v33 = vadd.f32 1.0, %v875_v53  ;;  %v916_v41 = vsel %vm2904_vm8, %v2886_v27, %v910_v44  ;;  %v946_v52 = vmul.f32 0.6931472, %v2076_v2  ;;  %v4150_v53 = vld [vmem:[#allocation43_spill] sm:$0xff]  ;;  %v4158_v2 = vld [vmem:[#allocation14_spill] sm:$0xff] }
 0x13e   : > { %v982_v18 = vsel %vm4136_vm3, %v2684_v32, %v934_v60  ;;  %2083 = vlog2.f32 %v764_v30  ;;  %v1013_v21 = vpack.c.bf16 %v981_v54, %v977_v37  ;;  %v838_v48 = vmul.f32 0.6931472, %v2074_v58  ;;  %v4154_v60 = vld [vmem:[#allocation18_spill] sm:$0xff] }
 0x13f   : > { %v1014_v11 = vpack.c.bf16 %v982_v18, %v978_v42  ;;  %v749_v4 = vmul.f32 -0.5, %v2612_v43  ;;  %v800_v26 = vadd.f32 1.0, %v2677_v23  ;;  %v983_v17 = vsel %vm599_vm13, %v2672_v15, %v943_v12 }
 0x140   : > { %v952_v32 = vsel %vm2920_vm14, %v949_v63, %v946_v52  ;;  %vm2973_vm5 = vcmp.lt.f32.partialorder %v842_v62, 0.0004427343  ;;  %v785_v27 = vmul.f32 -0.5, %v2674_v10  ;;  %vm581_vm6 = vcmp.gt.f32.partialorder %v2494_v6, 20.0  ;;  %v2078_v40 = vpop.eup %2077  ;;  %v4153_v62 = vld [vmem:[#allocation22_spill] sm:$0xff]  ;;  %v4162_v52 = vld [vmem:[#allocation15_spill] sm:$0xff] }
 0x141   : > { %1098 = vmatprep.subr.bf16.mxu0 %v1014_v11  ;;  %v980_v5 = vsel %vm596_vm15, %v2637_v20, %v916_v41  ;;  %v984_v15 = vsel %vm600_vm11, %v2715_v8, %v952_v32  ;;  %v841_v59 = vmul.f32 %v2759_v34, %v840_v47  ;;  %2085 = vlog2.f32 %v800_v26  ;;  %v4166_v32 = vld [vmem:[#allocation33_spill] sm:$0xff] }
 0x142   : > { %1099 = vmatpush1.bf16.msra.mxu0 %v1013_v21  ;;  %vm578_vm7 = vcmp.gt.f32.partialorder %v2511_v22, 20.0  ;;  %vm582_vm8 = vcmp.gt.f32.partialorder %v2535_v56, 20.0  ;;  %v1016_v3 = vpack.c.bf16 %v984_v15, %v980_v5  ;;  %v877_v14 = vmul.f32 %v2855_v49, %v876_v33  ;;  %v4159_v33 = vld [vmem:[#allocation9_spill] sm:$0xff]  ;;  %v4163_v21 = vld [vmem:[#allocation19_spill] sm:$0xff] }
 0x143   : > { %1100 = vmatprep.subr.bf16.mxu0 %v1010_v38  ;;  %vm2989_vm9 = vcmp.lt.f32.partialorder %v878_v25, 0.0004427343  ;;  %v674_v20 = vadd.f32 1.0, %v2577_v39  ;;  %v1015_v8 = vpack.c.bf16 %v983_v17, %v979_v13  ;;  %v844_v34 = vsel %vm2973_vm5, %v841_v59, %v838_v48 }
 0x144   : > { %v874_v61 = vmul.f32 0.6931472, %v2078_v40  ;;  %v750_v37 = vadd.f32 1.0, %v749_v4  ;;  %v4141_v28 = vand.u32 2147483647, %v2621_v55  ;;  %1171 = vmatprep.subr.bf16.mxu1 %v1016_v3  ;;  %v786_v0 = vadd.f32 1.0, %v785_v27 }
 0x145   : > { %v752_v49 = vand.u32 2147483647, %v2612_v43  ;;  %2087 = vlog2.f32 %v674_v20  ;;  %v710_v63 = vadd.f32 1.0, %v4144_v45  ;;  %v4146_v19 = vand.u32 2147483647, %v4145_v24  ;;  %1172 = vmatpush1.bf16.msra.mxu1 %v1015_v8  ;;  %v2080_v38 = vpop.eup %2079  ;;  %v4164_v4 = vld [vmem:[#allocation26_spill] sm:$0xff] }
 0x146   : > { %vm2998_vm10 = vcmp.lt.f32.partialorder %v4141_v28, 0.0004427343  ;;  %v1011_v55 = vpack.c.bf16 %v2875_v31, %v4149_v57  ;;  %v880_v1 = vsel %vm2989_vm9, %v877_v14, %v874_v61  ;;  %v4152_v50 = vpack.c.bf16 %v4150_v53, %v4151_v7  ;;  %v2082_v54 = vpop.eup %2081  ;;  %v4169_v20 = vld [vmem:[#allocation16_spill] sm:$0xff]  ;;  %v4178_v53 = vld [vmem:[#allocation10_spill] sm:$0xff] }
 0x147   : > { %vm3006_vm11 = vcmp.lt.f32.partialorder %v4146_v19, 0.0004427343  ;;  %v788_v44 = vand.u32 2147483647, %v2674_v10  ;;  %v767_v13 = vmul.f32 -0.5, %v2625_v16  ;;  %v972_v47 = vsel %vm588_vm1, %v2619_v46, %v844_v34  ;;  %v4176_v24 = vld [vmem:[#allocation40_spill] sm:$0xff] }
 0x148   : > { %1101 = vmatpush1.bf16.msra.mxu0 %v4152_v50  ;;  %v976_v31 = vsel %vm592_vm2, %v2696_v36, %v880_v1  ;;  %2089 = vlog2.f32 %v710_v63  ;;  %v692_v58 = vadd.f32 1.0, %v4153_v62  ;;  %v4155_v25 = vand.u32 2147483647, %v4154_v60  ;;  %v4177_v19 = vld [vmem:[#allocation36_spill] sm:$0xff]  ;;  %v4180_v50 = vld [vmem:[#allocation37_spill] sm:$0xff]  ;;  %v4185_v60 = vld [vmem:[#allocation34_spill] sm:$0xff] }
 0x149   : > { %vm583_vm13 = vcmp.gt.f32.partialorder %v4158_v2, 20.0  ;;  %v1012_v12 = vpack.c.bf16 %v976_v31, %v972_v47  ;;  %v748_v42 = vmul.f32 0.6931472, %v2080_v38  ;;  %v751_v46 = vmul.f32 %v2612_v43, %v750_v37  ;;  %v4179_v7 = vld [vmem:[#allocation12_spill] sm:$0xff]  ;;  %v4184_v31 = vld [vmem:[#allocation5_spill] sm:$0xff] }
 0x14a   : > { %vm3028_vm12 = vcmp.lt.f32.partialorder %v4155_v25, 0.0004427343  ;;  %v803_v18 = vmul.f32 -0.5, %v2677_v23  ;;  %vm579_vm14 = vcmp.gt.f32.partialorder %v4159_v33, 20.0  ;;  %vm3036_vm15 = vcmp.lt.f32.partialorder %v752_v49, 0.0004427343 }
 0x14b   : > { %v784_v11 = vmul.f32 0.6931472, %v2082_v54  ;;  %v787_v41 = vmul.f32 %v2674_v10, %v786_v0  ;;  %2091 = vlog2.f32 %v692_v58  ;;  %vm580_vm0 = vcmp.gt.f32.partialorder %v4162_v52, 20.0  ;;  %1173 = vmatprep.subr.bf16.mxu1 %v1012_v12  ;;  %v2084_v40 = vpop.eup %2083  ;;  %v4173_v49 = vld [vmem:[#allocation7_spill] sm:$0xff]  ;;  %v4187_v36 = vld [vmem:[#allocation17_spill] sm:$0xff] }
 0x14c   : > { %vm584_vm1 = vcmp.gt.f32.partialorder %v4163_v21, 20.0  ;;  %v754_v43 = vsel %vm3036_vm15, %v751_v46, %v748_v42  ;;  %vm789_vm2 = vcmp.lt.f32.partialorder %v788_v44, 0.0004427343  ;;  %v768_v48 = vadd.f32 1.0, %v767_v13  ;;  %1174 = vmatpush1.bf16.msra.mxu1 %v1011_v55  ;;  %v4181_v44 = vld [vmem:[#allocation30_spill] sm:$0xff]  ;;  %v4186_v25 = vld [vmem:[#allocation27_spill] sm:$0xff] }
 0x14d   : > { %v728_v26 = vadd.f32 1.0, %v4164_v4  ;;  %v4168_v27 = vsel %vm2688_vm4, %v4166_v32, %v4167_v35  ;;  %v790_v5 = vsel %vm789_vm2, %v787_v41, %v784_v11  ;;  %v770_v15 = vand.u32 2147483647, %v2625_v16  ;;  %v3206_v41 = vpop.permute.xlu1 %1054 }
 0x14e   : > { %v965_v10 = vsel %vm581_vm6, %v2494_v6, %v4168_v27  ;;  %v677_v59 = vmul.f32 -0.5, %v2577_v39  ;;  %v962_v3 = vsel %vm578_vm7, %v2511_v22, %v754_v43  ;;  %v966_v14 = vsel %vm582_vm8, %v2535_v56, %v790_v5  ;;  %v4174_v22 = vld [vmem:[#allocation31_spill] sm:$0xff]  ;;  %v2086_v1 = vpop.eup %2085 }
 0x14f   : > { %v804_v51 = vadd.f32 1.0, %v803_v18  ;;  %2093 = vlog2.f32 %v728_v26  ;;  %v4170_v8 = vand.u32 2147483647, %v4169_v20  ;;  %v1006_v34 = vpack.c.bf16 %v966_v14, %v962_v3  ;;  %v4175_v56 = vld [vmem:[#allocation39_spill] sm:$0xff]  ;;  %v4193_v3 = vld [vmem:[#allocation32_spill] sm:$0xff] }
 0x150   : > { %v766_v61 = vmul.f32 0.6931472, %v2084_v40  ;;  %v806_v37 = vand.u32 2147483647, %v2677_v23  ;;  %v713_v28 = vmul.f32 -0.5, %v4144_v45  ;;  %vm573_vm3 = vcmp.gt.f32.partialorder %v4173_v49, 20.0 }
 0x151   : > { %vm3064_vm4 = vcmp.lt.f32.partialorder %v4170_v8, 0.0004427343  ;;  %v3072_v0 = vmul.f32 0.6931472, %v4174_v22  ;;  %v1005_v63 = vpack.c.bf16 %v965_v10, %v4175_v56  ;;  %v799_v57 = vsel %vm2998_vm10, %v4177_v19, %v4176_v24  ;;  %1102 = vmatprep.subr.bf16.mxu0 %v1006_v34  ;;  %v4194_v14 = vld [vmem:[#allocation23_spill] sm:$0xff] }
 0x152   : > { %v769_v55 = vmul.f32 %v2625_v16, %v768_v48  ;;  %vm570_vm5 = vcmp.gt.f32.partialorder %v4178_v53, 20.0  ;;  %vm574_vm6 = vcmp.gt.f32.partialorder %v4179_v7, 20.0  ;;  %v763_v13 = vsel %vm3006_vm11, %v4181_v44, %v4180_v50  ;;  %v2088_v18 = vpop.eup %2087 }
 0x153   : > { %vm3086_vm7 = vcmp.lt.f32.partialorder %v770_v15, 0.0004427343  ;;  %v678_v47 = vadd.f32 1.0, %v677_v59  ;;  %v680_v9 = vand.u32 2147483647, %v2577_v39  ;;  %vm569_vm8 = vcmp.gt.f32.partialorder %v4184_v31, 20.0  ;;  %1103 = vmatpush1.bf16.msra.mxu0 %v1005_v63 }
 0x154   : > { %v772_v16 = vsel %vm3086_vm7, %v769_v55, %v766_v61  ;;  %v802_v58 = vmul.f32 0.6931472, %v2086_v1  ;;  %v805_v54 = vmul.f32 %v2677_v23, %v804_v51  ;;  %v695_v29 = vmul.f32 -0.5, %v4153_v62  ;;  %v4195_v51 = vld [vmem:[#allocation29_spill] sm:$0xff] }
 0x155   : > { %v709_v12 = vsel %vm3028_vm12, %v4186_v25, %v4185_v60  ;;  %v967_v42 = vsel %vm583_vm13, %v4158_v2, %v799_v57  ;;  %vm807_vm9 = vcmp.lt.f32.partialorder %v806_v37, 0.0004427343  ;;  %v714_v46 = vadd.f32 1.0, %v713_v28  ;;  %v2090_v35 = vpop.eup %2089  ;;  %v4196_v28 = vld [vmem:[#allocation20_spill] sm:$0xff] }
 0x156   : > { %v4188_v11 = vand.u32 2147483647, %v4187_v36  ;;  %v963_v23 = vsel %vm579_vm14, %v4159_v33, %v763_v13  ;;  %v808_v43 = vsel %vm807_vm9, %v805_v54, %v802_v58  ;;  %v716_v30 = vand.u32 2147483647, %v4144_v45  ;;  %v4200_v57 = vld [vmem:[#allocation28_spill] sm:$0xff]  ;;  %v4203_v13 = vld [vmem:[#allocation25_spill] sm:$0xff] }
 0x157   : > { %v731_v48 = vmul.f32 -0.5, %v4164_v4  ;;  %v964_v2 = vsel %vm580_vm0, %v4162_v52, %v772_v16  ;;  %v968_v26 = vsel %vm584_vm1, %v4163_v21, %v808_v43  ;;  %v676_v17 = vmul.f32 0.6931472, %v2088_v18  ;;  %v4206_v16 = vld [vmem:[#allocation13_spill] sm:$0xff]  ;;  %v1965_v18 = vld [vmem:[%s3979_s3 + $0x10] sm:$0xff]   ;;  %v1966_v36 = vld [vmem:[%s3979_s3 + $0x18] sm:$0xff]   ;;  %v3210_v43 = vpop.permute.xlu1 %1044 }
 0x158   : > { %vm3105_vm10 = vcmp.lt.f32.partialorder %v4188_v11, 0.0004427343  ;;  %v679_v32 = vmul.f32 %v2577_v39, %v678_v47  ;;  %v1007_v27 = vpack.c.bf16 %v967_v42, %v963_v23  ;;  %v1008_v10 = vpack.c.bf16 %v968_v26, %v964_v2  ;;  %v2092_v21 = vpop.eup %2091  ;;  %v4204_v47 = vld [vmem:[#allocation11_spill] sm:$0xff]  ;;  %v3204_v11 = vpop.permute.xlu0 %1049 }
 0x159   : > { %vm3121_vm11 = vcmp.lt.f32.partialorder %v680_v9, 0.0004427343  ;;  %v696_v5 = vadd.f32 1.0, %v695_v29  ;;  %v712_v59 = vmul.f32 0.6931472, %v2090_v35  ;;  %v715_v52 = vmul.f32 %v4144_v45, %v714_v46  ;;  %v4205_v9 = vld [vmem:[#allocation8_spill] sm:$0xff] }
 0x15a   : > { %v682_v15 = vsel %vm3121_vm11, %v679_v32, %v676_v17  ;;  %v698_v40 = vand.u32 2147483647, %v4153_v62  ;;  %v673_v39 = vsel %vm3064_vm4, %v4194_v14, %v4193_v3  ;;  %v685_v20 = vmul.f32 0.6931472, %v4195_v51  ;;  %1175 = vmatprep.subr.bf16.mxu1 %v1008_v10  ;;  %v1964_v46 = vld [vmem:[%s3979_s3 + $0x8] sm:$0xff]  }
 0x15b   : > { %vm717_vm12 = vcmp.lt.f32.partialorder %v716_v30, 0.0004427343  ;;  %v732_v8 = vadd.f32 1.0, %v731_v48  ;;  %v957_v34 = vsel %vm573_vm3, %v4173_v49, %v709_v12  ;;  %1176 = vmatpush1.bf16.msra.mxu1 %v1007_v27  ;;  %v694_v45 = vmul.f32 0.6931472, %v2092_v21  ;;  %v3212_v32 = vpop.permute.xlu1 %1034 }
 0x15c   : > { %v718_v61 = vsel %vm717_vm12, %v715_v52, %v712_v59  ;;  %v734_v37 = vand.u32 2147483647, %v4164_v4  ;;  %v4197_v22 = vand.u32 2147483647, %v4196_v28  ;;  %v954_v6 = vsel %vm570_vm5, %v4178_v53, %v682_v15  ;;  %v2094_v24 = vpop.eup %2093  ;;  %v3208_v23 = vpop.permute.xlu0 %1039 }
 0x15d   : > { %v958_v63 = vsel %vm574_vm6, %v4179_v7, %v718_v61  ;;  %v697_v49 = vmul.f32 %v4153_v62, %v696_v5  ;;  %v953_v19 = vsel %vm569_vm8, %v4184_v31, %v673_v39  ;;  %vm3158_vm14 = vcmp.lt.f32.partialorder %v698_v40, 0.0004427343 }
 0x15e   : > { %vm3140_vm13 = vcmp.lt.f32.partialorder %v4197_v22, 0.0004427343  ;;  %v1002_v1 = vpack.c.bf16 %v958_v63, %v954_v6  ;;  %v1001_v53 = vpack.c.bf16 %v957_v34, %v953_v19  ;;  %v730_v62 = vmul.f32 0.6931472, %v2094_v24 }
 0x15f   : > { %v727_v55 = vsel %vm3140_vm13, %v4200_v57, %v3072_v0  ;;  %v700_v7 = vsel %vm3158_vm14, %v697_v49, %v694_v45  ;;  %v733_v44 = vmul.f32 %v4164_v4, %v732_v8  ;;  %v691_v38 = vsel %vm3105_vm10, %v4203_v13, %v685_v20  ;;  %v1963_v0 = vld [vmem:[%s3979_s3] sm:$0xff]   ;;  %v4207_v4 = vld [vmem:[#allocation6_spill] sm:$0xff]  ;;  %v1025_v40 = vpop.permute.xlu1 %1024 }
 0x160   : > { %vm572_vm15 = vcmp.gt.f32.partialorder %v4204_v47, 20.0  ;;  %vm575_vm0 = vcmp.gt.f32.partialorder %v4205_v9, 20.0  ;;  %1104 = vmatprep.subr.bf16.mxu0 %v1002_v1  ;;  %vm735_vm1 = vcmp.lt.f32.partialorder %v734_v37, 0.0004427343  ;;  %vm576_vm2 = vcmp.gt.f32.partialorder %v4206_v16, 20.0  ;;  %v1030_v48 = vpop.permute.xlu0 %1029 }
 0x161   : > { %v959_v31 = vsel %vm575_vm0, %v4205_v9, %v727_v55  ;;  %v736_v58 = vsel %vm735_vm1, %v733_v44, %v730_v62  ;;  %1105 = vmatpush1.bf16.msra.mxu0 %v1001_v53  ;;  %vm4061_vm4 = vcmask 523264   ;;  %vm571_vm3 = vcmp.gt.f32.partialorder %v4207_v4, 20.0 }
 0x162   : > { %v956_v54 = vsel %vm572_vm15, %v4204_v47, %v700_v7  ;;  %v960_v29 = vsel %vm576_vm2, %v4206_v16, %v736_v58  ;;  %v955_v60 = vsel %vm571_vm3, %v4207_v4, %v691_v38  ;;  %v4208_v42 = vmov 0  }
 0x163   : > { %v1004_v25 = vpack.c.bf16 %v960_v29, %v956_v54  ;;  %v1003_v12 = vpack.c.bf16 %v959_v31, %v955_v60 }
 0x164   : > { %1901 = vmatmul.mubr.msk.bf16.vlgmr.msra.gmra.mxu0 %vm4061_vm4, %v1963_v0  ;;  %v1020_v27 = vpop.permute.xlu0 %1019 }
 0x165   : > { %1177 = vmatprep.subr.bf16.mxu1 %v1004_v25  ;;  %1132 = vmatprep.mubr.bf16.mxu0 %v4208_v42 }
 0x166   : > { %1178 = vmatpush1.bf16.msra.mxu1 %v1003_v12 }
 0x169   : > { %1905 = vmatmul.mubr.msk.bf16.vlgmr.msra.gmra.mxu1 %vm4061_vm4, %v1963_v0 }
 0x16a   : > { %1205 = vmatprep.mubr.bf16.mxu1 %v4208_v42 }
 0x16c   : > { %1902 = vmatmul.mubr.msk.bf16.gmra.mxu0 %vm4061_vm4, %v1964_v46 }
 0x16d   : > { %1142 = vmatprep.mubr.bf16.mxu0 %v4208_v42 }
 0x171   : > { %1906 = vmatmul.mubr.msk.bf16.gmra.mxu1 %vm4061_vm4, %v1964_v46 }
 0x172   : > { %1215 = vmatprep.mubr.bf16.mxu1 %v4208_v42 }
 0x174   : > { %1903 = vmatmul.mubr.msk.bf16.gmra.mxu0 %vm4061_vm4, %v1965_v18 }
 0x175   : > { %1152 = vmatprep.mubr.bf16.mxu0 %v4208_v42 }
 0x179   : > { %1907 = vmatmul.mubr.msk.bf16.gmra.mxu1 %vm4061_vm4, %v1965_v18 }
 0x17a   : > { %1225 = vmatprep.mubr.bf16.mxu1 %v4208_v42 }
 0x17c   : > { %1904 = vmatmul.mubr.msk.bf16.gmra.mxu0 %vm4061_vm4, %v1966_v36 }
 0x17d   : > { %1742 = vmatprep.mubr.bf16.mxu0 %v4208_v42 }
 0x181   : > { %1908 = vmatmul.mubr.msk.bf16.gmra.mxu1 %vm4061_vm4, %v1966_v36 }
 0x182   : > { %1783 = vmatprep.mubr.bf16.mxu1 %v4208_v42 }
 0x224   : > { %v1124_v30 = vpop.f32.mrf.mxu0 }
 0x225   : > { %v3214_v33 = vadd.f32 %v1124_v30, %v1020_v27 }
 0x226   : > { %v1126_v2 = vpop.f32.mrf.mxu0 }
 0x227   : > { %4209 = vst [vmem:[#allocation24_spill] sm:$0xff] %v3214_v33  ;;  %v1236_v52 = vmin.f32 %v3214_v33, 20.0  ;;  %v3233_v19 = vadd.f32 %v1126_v2, %v1020_v27 }
 0x228   : > { %v1128_v26 = vpop.f32.mrf.mxu0 }
 0x229   : > { %v1197_v17 = vpop.f32.mrf.mxu1  ;;  %v3217_v3 = vadd.f32 %v1128_v26, %v1025_v40  ;;  %v1300_v51 = vmul.f32 1.442695, %v1236_v52  ;;  %4214 = vst [vmem:[#allocation22_spill] sm:$0xff] %v3233_v19  ;;  %v1237_v44 = vmin.f32 %v3233_v19, 20.0 }
 0x22a   : > { %v1130_v35 = vpop.f32.mrf.mxu0  ;;  %v3219_v39 = vadd.f32 %v1197_v17, %v1020_v27 }
 0x22b   : > { %v1199_v10 = vpop.f32.mrf.mxu1  ;;  %4210 = vst [vmem:[#allocation21_spill] sm:$0xff] %v3217_v3  ;;  %v1240_v34 = vmin.f32 %v3217_v3, 20.0  ;;  %2095 = vpow2.f32 %v1300_v51  ;;  %v3244_v13 = vadd.f32 %v1130_v35, %v1025_v40  ;;  %v1302_v54 = vmul.f32 1.442695, %v1237_v44 }
 0x22c   : > { %v1134_v15 = vpop.f32.mrf.mxu0  ;;  %4211 = vst [vmem:[#allocation42_spill] sm:$0xff] %v3219_v39  ;;  %v1238_v45 = vmin.f32 %v3219_v39, 20.0  ;;  %v3240_v53 = vadd.f32 %v1199_v10, %v1020_v27 }
 0x22d   : > { %v1201_v5 = vpop.f32.mrf.mxu1  ;;  %v3221_v20 = vadd.f32 %v1134_v15, %v1030_v48  ;;  %v1308_v56 = vmul.f32 1.442695, %v1240_v34  ;;  %4217 = vst [vmem:[#allocation9_spill] sm:$0xff] %v3244_v13  ;;  %v1241_v42 = vmin.f32 %v3244_v13, 20.0 }
 0x22e   : > { %v1136_v21 = vpop.f32.mrf.mxu0  ;;  %v3228_v28 = vadd.f32 %v1201_v5, %v1025_v40  ;;  %v1304_v49 = vmul.f32 1.442695, %v1238_v45  ;;  %4216 = vst [vmem:[#allocation14_spill] sm:$0xff] %v3240_v53  ;;  %v1239_v16 = vmin.f32 %v3240_v53, 20.0 }
 0x22f   : > { %v1203_v59 = vpop.f32.mrf.mxu1  ;;  %v1244_v22 = vmin.f32 %v3221_v20, 20.0  ;;  %2097 = vpow2.f32 %v1308_v56  ;;  %v3253_v29 = vadd.f32 %v1136_v21, %v1030_v48  ;;  %v1310_v10 = vmul.f32 1.442695, %v1241_v42 }
 0x230   : > { %v1138_v8 = vpop.f32.mrf.mxu0  ;;  %4212 = vst [vmem:[#allocation43_spill] sm:$0xff] %v3228_v28  ;;  %v1242_v55 = vmin.f32 %v3228_v28, 20.0  ;;  %2099 = vpow2.f32 %v1304_v49  ;;  %v3251_v58 = vadd.f32 %v1203_v59, %v1025_v40  ;;  %v1306_v36 = vmul.f32 1.442695, %v1239_v16 }
 0x231   : > { %v1207_v14 = vpop.f32.mrf.mxu1  ;;  %v3226_v37 = vadd.f32 %v1138_v8, %v3212_v32  ;;  %v1316_v1 = vmul.f32 1.442695, %v1244_v22  ;;  %v1245_v35 = vmin.f32 %v3253_v29, 20.0  ;;  %vm1276_vm9 = vcmp.gt.f32.partialorder %v3221_v20, 20.0 }
 0x232   : > { %v1140_v63 = vpop.f32.mrf.mxu0  ;;  %v3231_v24 = vadd.f32 %v1207_v14, %v1030_v48  ;;  %v1312_v9 = vmul.f32 1.442695, %v1242_v55  ;;  %4218 = vst [vmem:[#allocation15_spill] sm:$0xff] %v3251_v58  ;;  %v1243_v30 = vmin.f32 %v3251_v58, 20.0 }
 0x233   : > { %v1209_v61 = vpop.f32.mrf.mxu1  ;;  %v1248_v57 = vmin.f32 %v3226_v37, 20.0  ;;  %2101 = vpow2.f32 %v1316_v1  ;;  %v3268_v27 = vadd.f32 %v1140_v63, %v3212_v32  ;;  %v1318_v8 = vmul.f32 1.442695, %v1245_v35 }
 0x234   : > { %4213 = vst [vmem:[#allocation41_spill] sm:$0xff] %v3231_v24  ;;  %v1144_v7 = vpop.f32.mrf.mxu0  ;;  %v1246_v62 = vmin.f32 %v3231_v24, 20.0  ;;  %v3259_v46 = vadd.f32 %v1209_v61, %v1030_v48  ;;  %v1314_v59 = vmul.f32 1.442695, %v1243_v30  ;;  %vm1280_vm10 = vcmp.gt.f32.partialorder %v3226_v37, 20.0 }
 0x235   : > { %v1211_v6 = vpop.f32.mrf.mxu1  ;;  %v1324_v38 = vmul.f32 1.442695, %v1248_v57  ;;  %v3248_v31 = vadd.f32 %v1144_v7, %v3208_v23  ;;  %v1249_v34 = vmin.f32 %v3268_v27, 20.0 }
 0x236   : > { %v3238_v50 = vadd.f32 %v1211_v6, %v3212_v32  ;;  %v1320_v4 = vmul.f32 1.442695, %v1246_v62  ;;  %4219 = vst [vmem:[#allocation19_spill] sm:$0xff] %v3259_v46  ;;  %v1247_v5 = vmin.f32 %v3259_v46, 20.0  ;;  %v1146_v15 = vpop.f32.mrf.mxu0 }
 0x237   : > { %v1213_v47 = vpop.f32.mrf.mxu1  ;;  %2103 = vpow2.f32 %v1324_v38  ;;  %v1252_v60 = vmin.f32 %v3248_v31, 20.0  ;;  %v1326_v62 = vmul.f32 1.442695, %v1249_v34  ;;  %vm1284_vm11 = vcmp.gt.f32.partialorder %v3248_v31, 20.0 }
 0x238   : > { %4215 = vst [vmem:[#allocation18_spill] sm:$0xff] %v3238_v50  ;;  %v1250_v0 = vmin.f32 %v3238_v50, 20.0  ;;  %v3256_v12 = vpop.eup %2095  ;;  %2105 = vpow2.f32 %v1312_v9  ;;  %v3276_v21 = vadd.f32 %v1213_v47, %v3212_v32  ;;  %v1322_v45 = vmul.f32 1.442695, %v1247_v5  ;;  %v1148_v56 = vpop.f32.mrf.mxu0 }
 0x239   : > { %v1217_v25 = vpop.f32.mrf.mxu1  ;;  %2107 = vpow2.f32 %v1320_v4  ;;  %v1332_v2 = vmul.f32 1.442695, %v1252_v60  ;;  %v1364_v17 = vadd.f32 1.0, %v3256_v12  ;;  %v1367_v48 = vmul.f32 -0.5, %v3256_v12 }
 0x23a   : > { %v1328_v18 = vmul.f32 1.442695, %v1250_v0  ;;  %v3263_v26 = vadd.f32 %v1217_v25, %v3208_v23  ;;  %2109 = vpow2.f32 %v1302_v54  ;;  %4220 = vst [vmem:[#allocation26_spill] sm:$0xff] %v3276_v21  ;;  %v1251_v55 = vmin.f32 %v3276_v21, 20.0  ;;  %v1150_v16 = vpop.f32.mrf.mxu0 }
 0x23b   : > { %v3278_v14 = vpop.f32.mrf.mxu1  ;;  %v1368_v61 = vadd.f32 1.0, %v1367_v48  ;;  %v1370_v7 = vand.u32 2147483647, %v3256_v12  ;;  %v3292_v44 = vadd.f32 %v1148_v56, %v3210_v43  ;;  %v3304_v60 = vadd.f32 %v1146_v15, %v3208_v23 }
 0x23c   : > { %2111 = vpow2.f32 %v1328_v18  ;;  %v1254_v52 = vmin.f32 %v3263_v26, 20.0  ;;  %v3273_v40 = vpop.eup %2097  ;;  %v1330_v18 = vmul.f32 1.442695, %v1251_v55  ;;  %v3316_v35 = vadd.f32 %v1150_v16, %v3210_v43 }
 0x23d   : > { %2113 = vpow2.f32 %v1306_v36  ;;  %v3280_v51 = vpop.eup %2099  ;;  %v1400_v63 = vadd.f32 1.0, %v3273_v40  ;;  %v1403_v32 = vmul.f32 -0.5, %v3273_v40  ;;  %v1221_v1 = vpop.f32.mrf.mxu1  ;;  %v3297_v47 = vmul.f32 %v3256_v12, %v1368_v61 }
 0x23e   : > { %2115 = vpow2.f32 %v1332_v2  ;;  %4221 = vst [vmem:[#allocation35_spill] sm:$0xff] %v3280_v51  ;;  %v1336_v22 = vmul.f32 1.442695, %v1254_v52  ;;  %v1382_v49 = vadd.f32 1.0, %v3280_v51  ;;  %v1385_v57 = vmul.f32 -0.5, %v3280_v51 }
 0x23f   : > { %2117 = vlog2.f32 %v1364_v17  ;;  %4222 = vst [vmem:[#allocation33_spill] sm:$0xff] %v3297_v47  ;;  %v1404_v54 = vadd.f32 1.0, %v1403_v32  ;;  %v1256_v25 = vmin.f32 %v3292_v44, 20.0  ;;  %v3308_v12 = vadd.f32 %v1221_v1, %v3210_v43  ;;  %v3310_v36 = vpop.f32.mrf.mxu1 }
 0x240   : > { %2119 = vpow2.f32 %v1310_v10  ;;  %v3283_v6 = vpop.eup %2101  ;;  %v1386_v42 = vadd.f32 1.0, %v1385_v57  ;;  %v1253_v61 = vmin.f32 %v3304_v60, 20.0  ;;  %vm3332_vm5 = vcmp.lt.f32.partialorder %v1370_v7, 0.0004427343 }
 0x241   : > { %2121 = vpow2.f32 %v1314_v59  ;;  %v1436_v0 = vadd.f32 1.0, %v3283_v6  ;;  %v1340_v17 = vmul.f32 1.442695, %v1256_v25  ;;  %v1258_v15 = vmin.f32 %v3308_v12, 20.0  ;;  %v1154_v59 = vpop.f32.mrf.mxu0 }
 0x242   : > { %2123 = vpow2.f32 %v1336_v22  ;;  %v3327_v34 = vmul.f32 %v3273_v40, %v1404_v54  ;;  %v4227_v22 = vmov 0  ;;  %v1439_v56 = vmul.f32 -0.5, %v3283_v6 }
 0x243   : > { %2125 = vpow2.f32 %v1318_v8  ;;  %v4228_v22 = vsel %vm3332_vm5, 4294967295, %v4227_v22  ;;  %v1344_v55 = vmul.f32 1.442695, %v1258_v15  ;;  %v1257_v1 = vmin.f32 %v3316_v35, 20.0  ;;  %v1156_v15 = vpop.f32.mrf.mxu0 }
 0x244   : > { %v3294_v38 = vpop.eup %2103  ;;  %2127 = vpow2.f32 %v1322_v45  ;;  %4225 = vst [vmem:[#allocation7_spill] sm:$0xff] %v3327_v34  ;;  %4229 = vst [vmem:[#allocation39_spill] sm:$0xff] %v4228_v22  ;;  %v1440_v8 = vadd.f32 1.0, %v1439_v56  ;;  %vm1288_vm15 = vcmp.gt.f32.partialorder %v3292_v44, 20.0  ;;  %vm1290_vm1 = vcmp.gt.f32.partialorder %v3308_v12, 20.0 }
 0x245   : > { %v3301_v4 = vpop.eup %2105  ;;  %2129 = vlog2.f32 %v1400_v63  ;;  %v1472_v2 = vadd.f32 1.0, %v3294_v38 }
 0x246   : > { %4223 = vst [vmem:[#allocation38_spill] sm:$0xff] %v3301_v4  ;;  %2131 = vlog2.f32 %v1382_v49  ;;  %v3312_v30 = vpop.eup %2107  ;;  %v1418_v10 = vadd.f32 1.0, %v3301_v4  ;;  %v1421_v5 = vmul.f32 -0.5, %v3301_v4  ;;  %v1227_v49 = vpop.f32.mrf.mxu1 }
 0x247   : > { %2133 = vpow2.f32 %v1326_v62  ;;  %v3318_v48 = vpop.eup %2109  ;;  %v1454_v63 = vadd.f32 1.0, %v3312_v30  ;;  %v1457_v32 = vmul.f32 -0.5, %v3312_v30  ;;  %v3343_v62 = vadd.f32 %v1154_v59, %v3204_v11 }
 0x248   : > { %2135 = vlog2.f32 %v1436_v0  ;;  %v3346_v0 = vmul.f32 %v3280_v51, %v1386_v42  ;;  %v1422_v16 = vadd.f32 1.0, %v1421_v5  ;;  %v1442_v42 = vand.u32 2147483647, %v3283_v6  ;;  %v1229_v5 = vpop.f32.mrf.mxu1 }
 0x249   : > { %v3323_v52 = vpop.eup %2111  ;;  %2137 = vpow2.f32 %v1340_v17  ;;  %v1334_v17 = vmul.f32 1.442695, %v1253_v61  ;;  %v1458_v61 = vadd.f32 1.0, %v1457_v32  ;;  %v3376_v32 = vadd.f32 %v1227_v49, %v3204_v11 }
 0x24a   : > { %4224 = vst [vmem:[#allocation16_spill] sm:$0xff] %v3323_v52  ;;  %v3330_v45 = vpop.eup %2113  ;;  %2139 = vpow2.f32 %v1330_v18  ;;  %4230 = vst [vmem:[#allocation40_spill] sm:$0xff] %v3346_v0  ;;  %v1490_v54 = vadd.f32 1.0, %v3323_v52  ;;  %v1342_v18 = vmul.f32 1.442695, %v1257_v1  ;;  %v1158_v1 = vpop.f32.mrf.mxu0  ;;  %v3379_v0 = vmul.f32 %v3283_v6, %v1440_v8 }
 0x24b   : > { %4226 = vst [vmem:[#allocation31_spill] sm:$0xff] %v3330_v45  ;;  %v3339_v57 = vpop.eup %2115  ;;  %2141 = vlog2.f32 %v1472_v2  ;;  %v3354_v2 = vadd.f32 %v3278_v14, %v3208_v23  ;;  %v1260_v23 = vmin.f32 %v3343_v62, 20.0  ;;  %v3388_v49 = vmul.f32 %v3312_v30, %v1458_v61 }
 0x24c   : > { %v2118_v7 = vpop.eup %2117  ;;  %2143 = vlog2.f32 %v1418_v10  ;;  %v1508_v10 = vadd.f32 1.0, %v3339_v57  ;;  %vm3393_vm6 = vcmp.lt.f32.partialorder %v1442_v42, 0.0004427343  ;;  %v3401_v22 = vadd.f32 %v1229_v5, %v3204_v11  ;;  %v1160_v42 = vpop.f32.mrf.mxu0 }
 0x24d   : > { %v3349_v25 = vpop.eup %2119  ;;  %2145 = vpow2.f32 %v1344_v55  ;;  %v3362_v39 = vmul.f32 0.6931472, %v2118_v7  ;;  %v3368_v55 = vmul.f32 %v3301_v4, %v1422_v16  ;;  %v1255_v7 = vmin.f32 %v3354_v2, 20.0  ;;  %4234 = vst [vmem:[#allocation37_spill] sm:$0xff] %v3388_v49 }
 0x24e   : > { %v3356_v59 = vpop.eup %2121  ;;  %2147 = vlog2.f32 %v1454_v63  ;;  %v1475_v63 = vmul.f32 -0.5, %v3294_v38  ;;  %v1348_v53 = vmul.f32 1.442695, %v1260_v23  ;;  %v1478_v16 = vand.u32 2147483647, %v3294_v38 }
 0x24f   : > { %4231 = vst [vmem:[#allocation36_spill] sm:$0xff] %v3356_v59  ;;  %v3360_v9 = vpop.eup %2123  ;;  %4232 = vst [vmem:[#allocation10_spill] sm:$0xff] %v3362_v39  ;;  %2149 = vlog2.f32 %v1490_v54  ;;  %v1231_v54 = vpop.f32.mrf.mxu1  ;;  %v1262_v23 = vmin.f32 %v3376_v32, 20.0  ;;  %v3398_v4 = vadd.f32 %v1156_v15, %v3204_v11  ;;  %v1338_v61 = vmul.f32 1.442695, %v1255_v7 }
 0x250   : > { %v3365_v14 = vpop.eup %2125  ;;  %4233 = vst [vmem:[#allocation12_spill] sm:$0xff] %v3368_v55  ;;  %2151 = vpow2.f32 %v1334_v17  ;;  %v1526_v56 = vadd.f32 1.0, %v3360_v9  ;;  %v3407_v47 = vadd.f32 %v1231_v54, %v3206_v41  ;;  %v4238_v15 = vmov 0 }
 0x251   : > { %v3372_v58 = vpop.eup %2127  ;;  %2153 = vlog2.f32 %v1508_v10  ;;  %v1476_v10 = vadd.f32 1.0, %v1475_v63  ;;  %v1352_v39 = vmul.f32 1.442695, %v1262_v23  ;;  %vm3417_vm8 = vcmp.lt.f32.partialorder %v1478_v16, 0.0004427343  ;;  %v1233_v46 = vpop.f32.mrf.mxu1 }
 0x252   : > { %v2130_v28 = vpop.eup %2129  ;;  %2155 = vpow2.f32 %v1342_v18  ;;  %v3404_v18 = vadd.f32 %v1158_v1, %v3206_v41  ;;  %v1493_v5 = vmul.f32 -0.5, %v3323_v52  ;;  %v1261_v63 = vmin.f32 %v3398_v4, 20.0 }
 0x253   : > { %v2132_v55 = vpop.eup %2131  ;;  %2157 = vpow2.f32 %v1348_v53  ;;  %v4237_v53 = vand.u32 2147483647, %v3273_v40  ;;  %v1263_v7 = vmin.f32 %v3401_v22, 20.0  ;;  %v3426_v54 = vmul.f32 0.6931472, %v2130_v28 }
 0x254   : > { %v3391_v6 = vpop.eup %2133  ;;  %2159 = vlog2.f32 %v1526_v56  ;;  %v1264_v56 = vmin.f32 %v3404_v18, 20.0  ;;  %v3433_v19 = vadd.f32 %v1160_v42, %v3206_v41  ;;  %v1511_v28 = vmul.f32 -0.5, %v3339_v57 }
 0x255   : > { %v2136_v17 = vpop.eup %2135  ;;  %vm3413_vm7 = vcmp.lt.f32.partialorder %v4237_v53, 0.0004427343  ;;  %4243 = vst [vmem:[#allocation5_spill] sm:$0xff] %v3426_v54  ;;  %2161 = vpow2.f32 %v1352_v39  ;;  %v1350_v53 = vmul.f32 1.442695, %v1261_v63  ;;  %v1266_v39 = vmin.f32 %v3407_v47, 20.0 }
 0x256   : > { %v3409_v51 = vpop.eup %2137  ;;  %v4239_v15 = vsel %vm3413_vm7, 4294967295, %v4238_v15  ;;  %v1354_v13 = vmul.f32 1.442695, %v1263_v7  ;;  %v1438_v3 = vmul.f32 0.6931472, %v2136_v17  ;;  %2163 = vpow2.f32 %v1338_v61 }
 0x257   : > { %4240 = vst [vmem:[#allocation30_spill] sm:$0xff] %v4239_v15  ;;  %v3424_v1 = vpop.eup %2139  ;;  %v1544_v23 = vadd.f32 1.0, %v3409_v51  ;;  %v1477_v63 = vmul.f32 %v3294_v38, %v1476_v10  ;;  %v3445_v7 = vadd.f32 %v3310_v36, %v3210_v43  ;;  %2165 = vpow2.f32 %v1350_v53 }
 0x258   : > { %v2142_v16 = vpop.eup %2141  ;;  %v1356_v42 = vmul.f32 1.442695, %v1264_v56  ;;  %v1494_v17 = vadd.f32 1.0, %v1493_v5  ;;  %v3448_v61 = vmul.f32 0.6931472, %v2132_v55  ;;  %v1265_v50 = vmin.f32 %v3433_v19, 20.0 }
 0x259   : > { %v3435_v33 = vpop.eup %2143  ;;  %2167 = vlog2.f32 %v1544_v23  ;;  %v1360_v59 = vmul.f32 1.442695, %v1266_v39  ;;  %v1444_v43 = vsel %vm3393_vm6, %v3379_v0, %v1438_v3  ;;  %v1512_v36 = vadd.f32 1.0, %v1511_v28 }
 0x25a   : > { %4244 = vst [vmem:[#allocation34_spill] sm:$0xff] %v3435_v33  ;;  %v3440_v40 = vpop.eup %2145  ;;  %v1474_v33 = vmul.f32 0.6931472, %v2142_v16  ;;  %4245 = vst [vmem:[#allocation27_spill] sm:$0xff] %v3448_v61  ;;  %2169 = vpow2.f32 %v1354_v13  ;;  %v1514_v10 = vand.u32 2147483647, %v3339_v57  ;;  %v3459_v13 = vadd.f32 %v1233_v46, %v3206_v41 }
 0x25b   : > { %v2148_v49 = vpop.eup %2147  ;;  %v1562_v21 = vadd.f32 1.0, %v3440_v40  ;;  %v1259_v23 = vmin.f32 %v3445_v7, 20.0  ;;  %v1358_v55 = vmul.f32 1.442695, %v1265_v50  ;;  %v1529_v41 = vmul.f32 -0.5, %v3360_v9 }
 0x25c   : > { %v2150_v38 = vpop.eup %2149  ;;  %v1480_v3 = vsel %vm3417_vm8, %v1477_v63, %v1474_v33  ;;  %v3472_v53 = vmul.f32 0.6931472, %v2148_v49  ;;  %v1267_v50 = vmin.f32 %v3459_v13, 20.0  ;;  %v3481_v11 = vsel %vm1276_vm9, %v3221_v20, %v1444_v43 }
 0x25d   : > { %2171 = vlog2.f32 %v1562_v21  ;;  %v3455_v5 = vpop.eup %2151  ;;  %v3468_v21 = vmul.f32 %v3323_v52, %v1494_v17  ;;  %4248 = vst [vmem:[#allocation23_spill] sm:$0xff] %v3481_v11  ;;  %vm3484_vm12 = vcmp.lt.f32.partialorder %v1514_v10, 0.0004427343  ;;  %v1547_v49 = vmul.f32 -0.5, %v3409_v51 }
 0x25e   : > { %2173 = vpow2.f32 %v1356_v42  ;;  %v2154_v16 = vpop.eup %2153  ;;  %4247 = vst [vmem:[#allocation32_spill] sm:$0xff] %v3472_v53  ;;  %v3493_v56 = vsel %vm1280_vm10, %v3226_v37, %v1480_v3  ;;  %v1513_v28 = vmul.f32 %v3339_v57, %v1512_v36  ;;  %v1346_v39 = vmul.f32 1.442695, %v1259_v23 }
 0x25f   : > { %4246 = vst [vmem:[#allocation17_spill] sm:$0xff] %v3468_v21  ;;  %2175 = vpow2.f32 %v1360_v59  ;;  %v3470_v0 = vpop.eup %2155  ;;  %v1532_v59 = vand.u32 2147483647, %v3360_v9  ;;  %4251 = vst [vmem:[#allocation29_spill] sm:$0xff] %v3493_v56  ;;  %v1510_v42 = vmul.f32 0.6931472, %v2154_v16 }
 0x260   : > { %2177 = vpow2.f32 %v1358_v55  ;;  %v3476_v46 = vpop.eup %2157  ;;  %v1565_v17 = vmul.f32 -0.5, %v3440_v40  ;;  %v1362_v43 = vmul.f32 1.442695, %v1267_v50  ;;  %v1553_v10 = vadd.f32 1.0, %v3470_v0 }
 0x261   : > { %v1580_v20 = vadd.f32 1.0, %v3476_v46  ;;  %v2160_v63 = vpop.eup %2159  ;;  %v3501_v8 = vmul.f32 0.6931472, %v2150_v38  ;;  %v1530_v61 = vadd.f32 1.0, %v1529_v41  ;;  %v1550_v37 = vand.u32 2147483647, %v3409_v51 }
 0x262   : > { %v3499_v55 = vpop.eup %2161  ;;  %vm3504_vm13 = vcmp.lt.f32.partialorder %v1532_v59, 0.0004427343  ;;  %v4253_v57 = vmov 0  ;;  %v1548_v36 = vadd.f32 1.0, %v1547_v49  ;;  %v1517_v23 = vadd.f32 1.0, %v3455_v5 }
 0x263   : > { %4252 = vst [vmem:[#allocation20_spill] sm:$0xff] %v3501_v8  ;;  %2179 = vlog2.f32 %v1580_v20  ;;  %v4254_v57 = vsel %vm3504_vm13, 4294967295, %v4253_v57  ;;  %v3509_v16 = vpop.eup %2163  ;;  %v1583_v3 = vmul.f32 -0.5, %v3476_v46  ;;  %v1598_v38 = vadd.f32 1.0, %v3499_v55 }
 0x264   : > { %4255 = vst [vmem:[#allocation28_spill] sm:$0xff] %v4254_v57  ;;  %2181 = vpow2.f32 %v1362_v43  ;;  %v1520_v41 = vmul.f32 -0.5, %v3455_v5  ;;  %v3514_v50 = vpop.eup %2165  ;;  %v1516_v59 = vsel %vm3484_vm12, %v1513_v28, %v1510_v42  ;;  %v1566_v20 = vadd.f32 1.0, %v1565_v17 }
 0x265   : > { %2183 = vpow2.f32 %v1346_v39  ;;  %v1568_v49 = vand.u32 2147483647, %v3440_v40  ;;  %v3519_v54 = vmul.f32 0.6931472, %v2160_v63  ;;  %v3522_v39 = vmul.f32 %v3360_v9, %v1530_v61 }
 0x266   : > { %2185 = vlog2.f32 %v1553_v10  ;;  %v2168_v43 = vpop.eup %2167  ;;  %vm3524_vm14 = vcmp.lt.f32.partialorder %v1550_v37, 0.0004427343  ;;  %v1589_v15 = vadd.f32 1.0, %v3514_v50  ;;  %v1549_v33 = vmul.f32 %v3409_v51, %v1548_v36 }
 0x267   : > { %4256 = vst [vmem:[#allocation25_spill] sm:$0xff] %v3519_v54  ;;  %4257 = vst [vmem:[#allocation11_spill] sm:$0xff] %v3522_v39  ;;  %v3529_v21 = vpop.eup %2169  ;;  %v1601_v28 = vmul.f32 -0.5, %v3499_v55  ;;  %2187 = vlog2.f32 %v1517_v23  ;;  %v1556_v42 = vmul.f32 -0.5, %v3470_v0  ;;  %v3537_v9 = vsel %vm1284_vm11, %v3248_v31, %v1516_v59 }
 0x268   : > { %v1584_v61 = vadd.f32 1.0, %v1583_v3  ;;  %2189 = vlog2.f32 %v1598_v38  ;;  %v1521_v17 = vadd.f32 1.0, %v1520_v41  ;;  %v1546_v37 = vmul.f32 0.6931472, %v2168_v43 }
 0x269   : > { %v3543_v51 = vmul.f32 %v3440_v40, %v1566_v20  ;;  %vm3545_vm0 = vcmp.lt.f32.partialorder %v1568_v49, 0.0004427343  ;;  %2191 = vlog2.f32 %v1589_v15  ;;  %v1586_v3 = vand.u32 2147483647, %v3476_v46 }
 0x26a   : > { %v2172_v63 = vpop.eup %2171  ;;  %v1523_v41 = vand.u32 2147483647, %v3455_v5  ;;  %v1602_v59 = vadd.f32 1.0, %v1601_v28  ;;  %v1607_v15 = vadd.f32 1.0, %v3529_v21  ;;  %v1557_v49 = vadd.f32 1.0, %v1556_v42 }
 0x26b   : > { %v3540_v10 = vpop.eup %2173  ;;  %v3564_v43 = vmul.f32 %v3476_v46, %v1584_v61  ;;  %v1604_v31 = vand.u32 2147483647, %v3499_v55  ;;  %v3568_v8 = vmul.f32 %v3455_v5, %v1521_v17  ;;  %v1552_v56 = vsel %vm3524_vm14, %v1549_v33, %v1546_v37 }
 0x26c   : > { %v3549_v23 = vpop.eup %2175  ;;  %v1616_v38 = vadd.f32 1.0, %v3540_v10  ;;  %v1592_v28 = vmul.f32 -0.5, %v3514_v50  ;;  %v1559_v11 = vand.u32 2147483647, %v3470_v0  ;;  %v1564_v42 = vmul.f32 0.6931472, %v2172_v63 }
 0x26d   : > { %v3558_v40 = vpop.eup %2177  ;;  %v1634_v20 = vadd.f32 1.0, %v3549_v23  ;;  %vm3574_vm2 = vcmp.lt.f32.partialorder %v1586_v3, 0.0004427343  ;;  %v1619_v46 = vmul.f32 -0.5, %v3540_v10  ;;  %v1637_v61 = vmul.f32 -0.5, %v3549_v23 }
 0x26e   : > { %2193 = vlog2.f32 %v1616_v38  ;;  %v1625_v5 = vadd.f32 1.0, %v3558_v40  ;;  %v3582_v34 = vmul.f32 %v3499_v55, %v1602_v59  ;;  %v1595_v33 = vand.u32 2147483647, %v3514_v50 }
 0x26f   : > { %2195 = vlog2.f32 %v1634_v20  ;;  %v3586_v37 = vmul.f32 %v3470_v0, %v1557_v49  ;;  %v1628_v3 = vmul.f32 -0.5, %v3558_v40  ;;  %v1610_v38 = vmul.f32 -0.5, %v3529_v21 }
 0x270   : > { %v2180_v17 = vpop.eup %2179  ;;  %2197 = vlog2.f32 %v1607_v15  ;;  %v1535_v20 = vadd.f32 1.0, %v3509_v16  ;;  %v3598_v55 = vsel %vm1288_vm15, %v3292_v44, %v1552_v56  ;;  %vm1292_vm3 = vcmp.gt.f32.partialorder %v3343_v62, 20.0 }
 0x271   : > { %v3588_v63 = vpop.eup %2181  ;;  %2199 = vlog2.f32 %v1625_v5  ;;  %v1593_v0 = vadd.f32 1.0, %v1592_v28  ;;  %vm3602_vm6 = vcmp.lt.f32.partialorder %v1559_v11, 0.0004427343  ;;  %v1570_v5 = vsel %vm3545_vm0, %v3543_v51, %v1564_v42 }
 0x272   : > { %v3593_v45 = vpop.eup %2183  ;;  %v1643_v59 = vadd.f32 1.0, %v3588_v63  ;;  %v1620_v24 = vadd.f32 1.0, %v1619_v46  ;;  %v1622_v54 = vand.u32 2147483647, %v3540_v10  ;;  %v1638_v39 = vadd.f32 1.0, %v1637_v61 }
 0x273   : > { %v2186_v49 = vpop.eup %2185  ;;  %vm3610_vm8 = vcmp.lt.f32.partialorder %v1523_v41, 0.0004427343  ;;  %v1582_v56 = vmul.f32 0.6931472, %v2180_v17  ;;  %v1640_v11 = vand.u32 2147483647, %v3549_v23 }
 0x274   : > { %v1631_v28 = vand.u32 2147483647, %v3558_v40  ;;  %2201 = vlog2.f32 %v1643_v59  ;;  %v2188_v57 = vpop.eup %2187  ;;  %vm3617_vm10 = vcmp.lt.f32.partialorder %v1604_v31, 0.0004427343  ;;  %vm3621_vm11 = vcmp.lt.f32.partialorder %v1595_v33, 0.0004427343 }
 0x275   : > { %v1629_v41 = vadd.f32 1.0, %v1628_v3  ;;  %v1611_v42 = vadd.f32 1.0, %v1610_v38  ;;  %v1613_v46 = vand.u32 2147483647, %v3529_v21  ;;  %2203 = vlog2.f32 %v1535_v20  ;;  %v2190_v61 = vpop.eup %2189 }
 0x276   : > { %v3632_v31 = vsel %vm1290_vm1, %v3308_v12, %v1570_v5  ;;  %v1594_v33 = vmul.f32 %v3514_v50, %v1593_v0  ;;  %v1555_v59 = vmul.f32 0.6931472, %v2186_v49  ;;  %v2192_v52 = vpop.eup %2191  ;;  %v1621_v3 = vmul.f32 %v3540_v10, %v1620_v24 }
 0x277   : > { %vm3637_vm15 = vcmp.lt.f32.partialorder %v1622_v54, 0.0004427343  ;;  %v3642_v20 = vmul.f32 %v3549_v23, %v1638_v39  ;;  %v1646_v17 = vmul.f32 -0.5, %v3588_v63  ;;  %v1588_v12 = vsel %vm3574_vm2, %v3564_v43, %v1582_v56 }
 0x278   : > { %vm3649_vm1 = vcmp.lt.f32.partialorder %v1640_v11, 0.0004427343  ;;  %v1649_v24 = vand.u32 2147483647, %v3588_v63  ;;  %v1519_v54 = vmul.f32 0.6931472, %v2188_v57  ;;  %v1630_v39 = vmul.f32 %v3558_v40, %v1629_v41 }
 0x279   : > { %v1571_v10 = vadd.f32 1.0, %v3593_v45  ;;  %vm3657_vm14 = vcmp.lt.f32.partialorder %v1631_v28, 0.0004427343  ;;  %v1612_v53 = vmul.f32 %v3529_v21, %v1611_v42  ;;  %vm3662_vm2 = vcmp.lt.f32.partialorder %v1613_v46, 0.0004427343 }
 0x27a   : > { %v3666_v49 = vmul.f32 0.6931472, %v2190_v61  ;;  %v1591_v57 = vmul.f32 0.6931472, %v2192_v52  ;;  %v1561_v5 = vsel %vm3602_vm6, %v3586_v37, %v1555_v59  ;;  %v1676_v56 = vsel %vm1292_vm3, %v3343_v62, %v1588_v12 }
 0x27b   : > { %v2194_v0 = vpop.eup %2193  ;;  %2205 = vlog2.f32 %v1571_v10  ;;  %vm1298_vm4 = vcmp.gt.f32.partialorder %v3407_v47, 20.0  ;;  %v1647_v21 = vadd.f32 1.0, %v1646_v17  ;;  %v1445_v28 = vadd.f32 1.0, %v3365_v14 }
 0x27c   : > { %v2196_v40 = vpop.eup %2195  ;;  %v1618_v11 = vmul.f32 0.6931472, %v2194_v0  ;;  %vm1295_vm0 = vcmp.gt.f32.partialorder %v3401_v22, 20.0  ;;  %vm1299_vm12 = vcmp.gt.f32.partialorder %v3459_v13, 20.0  ;;  %vm3678_vm9 = vcmp.lt.f32.partialorder %v1649_v24, 0.0004427343 }
 0x27d   : > { %v1525_v37 = vsel %vm3610_vm8, %v3568_v8, %v1519_v54  ;;  %v1538_v62 = vmul.f32 -0.5, %v3509_v16  ;;  %v1481_v15 = vadd.f32 1.0, %v3391_v6  ;;  %v2198_v41 = vpop.eup %2197  ;;  %vm1294_vm3 = vcmp.gt.f32.partialorder %v3376_v32, 20.0 }
 0x27e   : > { %v1624_v42 = vsel %vm3637_vm15, %v1621_v3, %v1618_v11  ;;  %v1636_v46 = vmul.f32 0.6931472, %v2196_v40  ;;  %vm4282_vm6 = vcmp.gt.f32.partialorder %v3316_v35, 20.0  ;;  %2207 = vlog2.f32 %v1445_v28  ;;  %v2200_v17 = vpop.eup %2199 }
 0x27f   : > { %v1673_v61 = vsel %vm4282_vm6, %v3316_v35, %v1561_v5  ;;  %v1606_v8 = vsel %vm3617_vm10, %v3582_v34, %v3666_v49  ;;  %v1597_v44 = vsel %vm3621_vm11, %v1594_v33, %v1591_v57  ;;  %v1609_v59 = vmul.f32 0.6931472, %v2198_v41 }
 0x280   : > { %v1574_v12 = vmul.f32 -0.5, %v3593_v45  ;;  %v1627_v38 = vmul.f32 0.6931472, %v2200_v17  ;;  %v1648_v3 = vmul.f32 %v3588_v63, %v1647_v21  ;;  %vm4283_vm8 = vcmp.gt.f32.partialorder %v3304_v60, 20.0  ;;  %v4292_v17 = vld [vmem:[#allocation16_spill] sm:$0xff] }
 0x281   : > { %v1669_v35 = vsel %vm4283_vm8, %v3304_v60, %v1525_v37  ;;  %v1541_v24 = vand.u32 2147483647, %v3509_v16  ;;  %vm4284_vm15 = vcmp.gt.f32.partialorder %v3404_v18, 20.0  ;;  %v1539_v54 = vadd.f32 1.0, %v1538_v62  ;;  %v2202_v51 = vpop.eup %2201 }
 0x282   : > { %v1680_v36 = vsel %vm4284_vm15, %v3404_v18, %v1624_v42  ;;  %v1695_v34 = vpack.c.bf16 %v1673_v61, %v1669_v35  ;;  %2209 = vlog2.f32 %v1481_v15  ;;  %vm1286_vm10 = vcmp.gt.f32.partialorder %v3263_v26, 20.0  ;;  %v2204_v18 = vpop.eup %2203 }
 0x283   : > { %v1642_v63 = vsel %vm3649_vm1, %v3642_v20, %v1636_v46  ;;  %v1633_v33 = vsel %vm3657_vm14, %v1630_v39, %v1627_v38  ;;  %vm4285_vm11 = vcmp.gt.f32.partialorder %v3398_v4, 20.0  ;;  %v1463_v10 = vadd.f32 1.0, %v3372_v58  ;;  %v4298_v38 = vld [vmem:[#allocation25_spill] sm:$0xff] }
 0x284   : > { %v1677_v60 = vsel %vm4285_vm11, %v3398_v4, %v1597_v44  ;;  %vm1287_vm6 = vcmp.gt.f32.partialorder %v3354_v2, 20.0  ;;  %vm1291_vm8 = vcmp.gt.f32.partialorder %v3445_v7, 20.0  ;;  %vm4286_vm15 = vcmp.gt.f32.partialorder %v3433_v19, 20.0  ;;  %v4324_v44 = vld [vmem:[#allocation35_spill] sm:$0xff] }
 0x285   : > { %v1681_v0 = vsel %vm4286_vm15, %v3433_v19, %v1633_v33  ;;  %v1615_v20 = vsel %vm3662_vm2, %v1612_v53, %v1609_v59  ;;  %v1645_v50 = vmul.f32 0.6931472, %v2202_v51  ;;  %v1575_v39 = vadd.f32 1.0, %v1574_v12  ;;  %v4297_v12 = vld [vmem:[#allocation11_spill] sm:$0xff] }
 0x286   : > { %v1698_v23 = vpack.c.bf16 %v1680_v36, %v1676_v56  ;;  %v1699_v49 = vpack.c.bf16 %v1681_v0, %v1677_v60  ;;  %v1448_v4 = vmul.f32 -0.5, %v3365_v14  ;;  %2211 = vlog2.f32 %v1463_v10  ;;  %v4302_v10 = vld [vmem:[#allocation31_spill] sm:$0xff] }
 0x287   : > { %v1682_v57 = vsel %vm1298_vm4, %v3407_v47, %v1642_v63  ;;  %v1651_v5 = vsel %vm3678_vm9, %v1648_v3, %v1645_v50  ;;  %v1537_v40 = vmul.f32 0.6931472, %v2204_v18  ;;  %v1499_v19 = vadd.f32 1.0, %v3424_v1 }
 0x288   : > { %1718 = vmatprep.subr.bf16.mxu0 %v1699_v49  ;;  %v1679_v53 = vsel %vm1295_vm0, %v3401_v22, %v1615_v20  ;;  %v1683_v43 = vsel %vm1299_vm12, %v3459_v13, %v1651_v5  ;;  %v1577_v56 = vand.u32 2147483647, %v3593_v45  ;;  %v1484_v11 = vmul.f32 -0.5, %v3391_v6  ;;  %v2206_v22 = vpop.eup %2205  ;;  %v4303_v20 = vld [vmem:[#allocation18_spill] sm:$0xff] }
 0x289   : > { %v1678_v47 = vsel %vm1294_vm3, %v3376_v32, %v1606_v8  ;;  %v1701_v21 = vpack.c.bf16 %v1683_v43, %v1679_v53  ;;  %1719 = vmatpush1.bf16.msra.mxu0 %v1698_v23  ;;  %v1540_v28 = vmul.f32 %v3509_v16, %v1539_v54  ;;  %vm3744_vm4 = vcmp.lt.f32.partialorder %v1541_v24, 0.0004427343  ;;  %v4301_v54 = vld [vmem:[#allocation41_spill] sm:$0xff]  ;;  %v4311_v53 = vld [vmem:[#allocation32_spill] sm:$0xff] }
 0x28a   : > { %v4289_v37 = vand.u32 2147483647, %v3312_v30  ;;  %v1700_v62 = vpack.c.bf16 %v1682_v57, %v1678_v47  ;;  %1720 = vmatprep.subr.bf16.mxu0 %v1695_v34  ;;  %v1576_v15 = vmul.f32 %v3593_v45, %v1575_v39  ;;  %2213 = vlog2.f32 %v1499_v19  ;;  %v4306_v39 = vld [vmem:[#allocation36_spill] sm:$0xff]  ;;  %v4310_v57 = vld [vmem:[#allocation26_spill] sm:$0xff]  ;;  %v4312_v43 = vld [vmem:[#allocation37_spill] sm:$0xff] }
 0x28b   : > { %v1373_v32 = vadd.f32 1.0, %v3318_v48  ;;  %vm1277_vm12 = vcmp.gt.f32.partialorder %v3253_v29, 20.0  ;;  %vm1281_vm14 = vcmp.gt.f32.partialorder %v3268_v27, 20.0  ;;  %1759 = vmatprep.subr.bf16.mxu1 %v1701_v21  ;;  %v1543_v16 = vsel %vm3744_vm4, %v1540_v28, %v1537_v40  ;;  %v2208_v61 = vpop.eup %2207  ;;  %v4314_v47 = vld [vmem:[#allocation29_spill] sm:$0xff] }
 0x28c   : > { %vm3750_vm9 = vcmp.lt.f32.partialorder %v4289_v37, 0.0004427343  ;;  %v1573_v30 = vmul.f32 0.6931472, %v2206_v22  ;;  %v1449_v41 = vadd.f32 1.0, %v1448_v4  ;;  %v1409_v42 = vadd.f32 1.0, %v3349_v25  ;;  %1760 = vmatpush1.bf16.msra.mxu1 %v1700_v62 }
 0x28d   : > { %vm1578_vm0 = vcmp.lt.f32.partialorder %v1577_v56, 0.0004427343  ;;  %v1451_v46 = vand.u32 2147483647, %v3365_v14  ;;  %v1485_v45 = vadd.f32 1.0, %v1484_v11  ;;  %2215 = vlog2.f32 %v1373_v32  ;;  %v4309_v4 = vld [vmem:[#allocation19_spill] sm:$0xff] }
 0x28e   : > { %v4293_v8 = vand.u32 2147483647, %v4292_v17  ;;  %v4299_v3 = vsel %vm3504_vm13, %v4297_v12, %v4298_v38  ;;  %v1579_v24 = vsel %vm1578_vm0, %v1576_v15, %v1573_v30  ;;  %v4300_v36 = vpack.c.bf16 %v3598_v55, %v3537_v9  ;;  %v4313_v11 = vld [vmem:[#allocation23_spill] sm:$0xff]  ;;  %v4315_v22 = vld [vmem:[#allocation21_spill] sm:$0xff]  ;;  %v4316_v32 = vld [vmem:[#allocation24_spill] sm:$0xff] }
 0x28f   : > { %v1670_v35 = vsel %vm1286_vm10, %v3263_v26, %v4299_v3  ;;  %v1487_v34 = vand.u32 2147483647, %v3391_v6  ;;  %2217 = vlog2.f32 %v1409_v42  ;;  %vm1278_vm2 = vcmp.gt.f32.partialorder %v4301_v54, 20.0  ;;  %v2210_v0 = vpop.eup %2209  ;;  %v4318_v30 = vld [vmem:[#allocation9_spill] sm:$0xff]  ;;  %v4321_v38 = vld [vmem:[#allocation34_spill] sm:$0xff] }
 0x290   : > { %vm3764_vm1 = vcmp.lt.f32.partialorder %v4293_v8, 0.0004427343  ;;  %1721 = vmatpush1.bf16.msra.mxu0 %v4300_v36  ;;  %v1671_v51 = vsel %vm1287_vm6, %v3354_v2, %v1543_v16  ;;  %v1675_v63 = vsel %vm1291_vm8, %v3445_v7, %v1579_v24  ;;  %v1447_v33 = vmul.f32 0.6931472, %v2208_v61  ;;  %v4317_v16 = vld [vmem:[#allocation22_spill] sm:$0xff]  ;;  %v4320_v61 = vld [vmem:[#allocation17_spill] sm:$0xff] }
 0x291   : > { %v1466_v26 = vmul.f32 -0.5, %v3372_v58  ;;  %v1696_v60 = vpack.c.bf16 %v3632_v31, %v1670_v35  ;;  %v1697_v9 = vpack.c.bf16 %v1675_v63, %v1671_v51  ;;  %v1450_v55 = vmul.f32 %v3365_v14, %v1449_v41  ;;  %v1684_v24 = vld [vmem:[%s3981_s5] sm:$0x3] }
 0x292   : > { %v1391_v18 = vadd.f32 1.0, %v4302_v10  ;;  %vm1282_vm13 = vcmp.gt.f32.partialorder %v4303_v20, 20.0  ;;  %vm3792_vm3 = vcmp.lt.f32.partialorder %v1451_v46, 0.0004427343  ;;  %v1486_v2 = vmul.f32 %v3391_v6, %v1485_v45 }
 0x293   : > { %v1502_v7 = vmul.f32 -0.5, %v3424_v1  ;;  %v1427_v23 = vadd.f32 1.0, %v4306_v39  ;;  %1761 = vmatprep.subr.bf16.mxu1 %v1697_v9  ;;  %v1453_v31 = vsel %vm3792_vm3, %v1450_v55, %v1447_v33  ;;  %v1483_v14 = vmul.f32 0.6931472, %v2210_v0  ;;  %v2212_v19 = vpop.eup %2211 }
 0x294   : > { %vm3801_vm10 = vcmp.lt.f32.partialorder %v1487_v34, 0.0004427343  ;;  %2219 = vlog2.f32 %v1391_v18  ;;  %vm1279_vm11 = vcmp.gt.f32.partialorder %v4309_v4, 20.0  ;;  %vm1283_vm6 = vcmp.gt.f32.partialorder %v4310_v57, 20.0  ;;  %1762 = vmatpush1.bf16.msra.mxu1 %v1696_v60 }
 0x295   : > { %v1467_v6 = vadd.f32 1.0, %v1466_v26  ;;  %v1376_v5 = vmul.f32 -0.5, %v3318_v48  ;;  %v1412_v40 = vmul.f32 -0.5, %v3349_v25  ;;  %2221 = vlog2.f32 %v1427_v23 }
 0x296   : > { %v1462_v56 = vsel %vm3750_vm9, %v4312_v43, %v4311_v53  ;;  %v1690_v21 = vpack.c.bf16 %v4314_v47, %v4313_v11  ;;  %v1489_v28 = vsel %vm3801_vm10, %v1486_v2, %v1483_v14  ;;  %v1469_v52 = vand.u32 2147483647, %v3372_v58  ;;  %v4337_v47 = vld [vmem:[#allocation33_spill] sm:$0xff] }
 0x297   : > { %vm1272_vm8 = vcmp.gt.f32.partialorder %v4315_v22, 20.0  ;;  %v1661_v37 = vsel %vm1277_vm12, %v3253_v29, %v1453_v31  ;;  %v1665_v62 = vsel %vm1281_vm14, %v3268_v27, %v1489_v28  ;;  %v1465_v13 = vmul.f32 0.6931472, %v2212_v19  ;;  %v4319_v29 = vld [vmem:[#allocation20_spill] sm:$0xff]  ;;  %v2214_v12 = vpop.eup %2213 }
 0x298   : > { %v1503_v15 = vadd.f32 1.0, %v1502_v7  ;;  %vm1268_vm15 = vcmp.gt.f32.partialorder %v4316_v32, 20.0  ;;  %vm1269_vm4 = vcmp.gt.f32.partialorder %v4317_v16, 20.0  ;;  %vm1273_vm9 = vcmp.gt.f32.partialorder %v4318_v30, 20.0 }
 0x299   : > { %v1691_v41 = vpack.c.bf16 %v1665_v62, %v1661_v37  ;;  %v1505_v42 = vand.u32 2147483647, %v3424_v1  ;;  %v1379_v46 = vand.u32 2147483647, %v3318_v48  ;;  %v1415_v45 = vand.u32 2147483647, %v3349_v25 }
 0x29a   : > { %v1498_v27 = vsel %vm3764_vm1, %v4320_v61, %v4319_v29  ;;  %v1468_v17 = vmul.f32 %v3372_v58, %v1467_v6  ;;  %v1377_v8 = vadd.f32 1.0, %v1376_v5  ;;  %v1413_v59 = vadd.f32 1.0, %v1412_v40  ;;  %v2216_v26 = vpop.eup %2215  ;;  %v4334_v40 = vld [vmem:[#allocation5_spill] sm:$0xff]  ;;  %v4340_v37 = vld [vmem:[#allocation38_spill] sm:$0xff] }
 0x29b   : > { %v1420_v3 = vmul.f32 0.6931472, %v4321_v38  ;;  %v1662_v35 = vsel %vm1278_vm2, %v4301_v54, %v1462_v56  ;;  %1722 = vmatprep.subr.bf16.mxu0 %v1691_v41  ;;  %vm3840_vm12 = vcmp.lt.f32.partialorder %v1469_v52, 0.0004427343  ;;  %v1394_v36 = vmul.f32 -0.5, %v4302_v10 }
 0x29c   : > { %v4325_v34 = vand.u32 2147483647, %v4324_v44  ;;  %v1471_v51 = vsel %vm3840_vm12, %v1468_v17, %v1465_v13  ;;  %v1501_v63 = vmul.f32 0.6931472, %v2214_v12  ;;  %v1504_v33 = vmul.f32 %v3424_v1, %v1503_v15  ;;  %1723 = vmatpush1.bf16.msra.mxu0 %v1690_v21  ;;  %v2218_v18 = vpop.eup %2217  ;;  %v4338_v21 = vld [vmem:[#allocation10_spill] sm:$0xff]  ;;  %v4349_v12 = vld [vmem:[#allocation43_spill] sm:$0xff] }
 0x29d   : > { %v1430_v54 = vmul.f32 -0.5, %v4306_v39  ;;  %v1666_v60 = vsel %vm1282_vm13, %v4303_v20, %v1498_v27  ;;  %vm1506_vm0 = vcmp.lt.f32.partialorder %v1505_v42, 0.0004427343  ;;  %vm3858_vm1 = vcmp.lt.f32.partialorder %v1379_v46, 0.0004427343  ;;  %v4344_v42 = vld [vmem:[#allocation12_spill] sm:$0xff] }
 0x29e   : > { %vm3847_vm14 = vcmp.lt.f32.partialorder %v4325_v34, 0.0004427343  ;;  %vm3862_vm2 = vcmp.lt.f32.partialorder %v1415_v45, 0.0004427343  ;;  %v1507_v0 = vsel %vm1506_vm0, %v1504_v33, %v1501_v63  ;;  %v1375_v1 = vmul.f32 0.6931472, %v2216_v26 }
 0x29f   : > { %v1378_v50 = vmul.f32 %v3318_v48, %v1377_v8  ;;  %v1414_v2 = vmul.f32 %v3349_v25, %v1413_v59  ;;  %v1663_v20 = vsel %vm1279_vm11, %v4309_v4, %v1471_v51  ;;  %v1667_v7 = vsel %vm1283_vm6, %v4310_v57, %v1507_v0  ;;  %v4333_v25 = vld [vmem:[#allocation7_spill] sm:$0xff] }
 0x2a0   : > { %v1411_v23 = vmul.f32 0.6931472, %v2218_v18  ;;  %v1395_v31 = vadd.f32 1.0, %v1394_v36  ;;  %v1693_v14 = vpack.c.bf16 %v1667_v7, %v1663_v20  ;;  %v1397_v6 = vand.u32 2147483647, %v4302_v10  ;;  %v4347_v8 = vld [vmem:[#allocation27_spill] sm:$0xff] }
 0x2a1   : > { %v1381_v49 = vsel %vm3858_vm1, %v1378_v50, %v1375_v1  ;;  %v1431_v5 = vadd.f32 1.0, %v1430_v54  ;;  %v4335_v19 = vsel %vm3413_vm7, %v4333_v25, %v4334_v40  ;;  %v1692_v53 = vpack.c.bf16 %v1666_v60, %v1662_v35  ;;  %v2220_v56 = vpop.eup %2219  ;;  %v4351_v35 = vld [vmem:[#allocation15_spill] sm:$0xff]  ;;  %v4352_v36 = vld [vmem:[#allocation42_spill] sm:$0xff]  ;;  %v1705_v54 = vpop.permute.xlu0 %1704 }
 0x2a2   : > { %v1656_v4 = vsel %vm1272_vm8, %v4315_v22, %v4335_v19  ;;  %v1417_v57 = vsel %vm3862_vm2, %v1414_v2, %v1411_v23  ;;  %v1433_v43 = vand.u32 2147483647, %v4306_v39  ;;  %v4339_v28 = vsel %vm3332_vm5, %v4337_v47, %v4338_v21  ;;  %1763 = vmatprep.subr.bf16.mxu1 %v1693_v14  ;;  %v2222_v41 = vpop.eup %2221 }
 0x2a3   : > { %v1652_v52 = vsel %vm1268_vm15, %v4316_v32, %v4339_v28  ;;  %v4341_v62 = vand.u32 2147483647, %v4340_v37  ;;  %v1653_v13 = vsel %vm1269_vm4, %v4317_v16, %v1381_v49  ;;  %v1657_v15 = vsel %vm1273_vm9, %v4318_v30, %v1417_v57  ;;  %1764 = vmatpush1.bf16.msra.mxu1 %v1692_v53  ;;  %v4348_v30 = vld [vmem:[#allocation40_spill] sm:$0xff] }
 0x2a4   : > { %v1687_v46 = vpack.c.bf16 %v1657_v15, %v1653_v13  ;;  %v1393_v45 = vmul.f32 0.6931472, %v2220_v56  ;;  %v1396_v29 = vmul.f32 %v4302_v10, %v1395_v31  ;;  %v1686_v61 = vpack.c.bf16 %v1656_v4, %v1652_v52  ;;  %v4350_v10 = vld [vmem:[#allocation14_spill] sm:$0xff] }
 0x2a5   : > { %vm3898_vm7 = vcmp.lt.f32.partialorder %v4341_v62, 0.0004427343  ;;  %vm3912_vm5 = vcmp.lt.f32.partialorder %v1397_v6, 0.0004427343  ;;  %v1429_v16 = vmul.f32 0.6931472, %v2222_v41  ;;  %v1432_v17 = vmul.f32 %v4306_v39, %v1431_v5 }
 0x2a6   : > { %v1426_v32 = vsel %vm3898_vm7, %v4344_v42, %v1420_v3  ;;  %v1390_v59 = vsel %vm3847_vm14, %v4348_v30, %v4347_v8  ;;  %vm1274_vm13 = vcmp.gt.f32.partialorder %v4349_v12, 20.0  ;;  %1724 = vmatprep.subr.bf16.mxu0 %v1687_v46  ;;  %v1399_v38 = vsel %vm3912_vm5, %v1396_v29, %v1393_v45 }
 0x2a7   : > { %vm1434_vm3 = vcmp.lt.f32.partialorder %v1433_v43, 0.0004427343  ;;  %vm1271_vm10 = vcmp.gt.f32.partialorder %v4350_v10, 20.0  ;;  %v1658_v3 = vsel %vm1274_vm13, %v4349_v12, %v1426_v32  ;;  %vm1275_vm11 = vcmp.gt.f32.partialorder %v4351_v35, 20.0  ;;  %1725 = vmatpush1.bf16.msra.mxu0 %v1686_v61 }
 0x2a8   : > { %v1435_v39 = vsel %vm1434_vm3, %v1432_v17, %v1429_v16  ;;  %vm1270_vm6 = vcmp.gt.f32.partialorder %v4352_v36, 20.0  ;;  %v1655_v44 = vsel %vm1271_vm10, %v4350_v10, %v1399_v38  ;;  %vm4353_vm8 = vcmask 523264  }
 0x2a9   : > { %v1659_v34 = vsel %vm1275_vm11, %v4351_v35, %v1435_v39  ;;  %v1654_v58 = vsel %vm1270_vm6, %v4352_v36, %v1390_v59  ;;  %vm4354_vm15 = vmmov %vm4353_vm8 }
 0x2aa   : > { %v1689_v51 = vpack.c.bf16 %v1659_v34, %v1655_v44  ;;  %v1688_v63 = vpack.c.bf16 %v1658_v3, %v1654_v58  ;;  %1909 = vmatmul.mubr.msk.bf16.vlgmr.msra.gmra.mxu0 %vm4353_vm8, %v1684_v24 }
 0x2ac   : > { %1765 = vmatprep.subr.bf16.mxu1 %v1689_v51 }
 0x2ad   : > { %1766 = vmatpush1.bf16.msra.mxu1 %v1688_v63 }
 0x2b0   : > { %1910 = vmatmul.mubr.msk.bf16.vlgmr.msra.gmra.mxu1 %vm4354_vm15, %v1684_v24 }
 0x36a   : > { %v1744_v33 = vpop.f32.mrf.mxu0 }
 0x36b   : > { %v1745_v60 = vadd.f32 %v1744_v33, %v1705_v54 }
 0x36c   : > { %v1746_v26 = vpop.f32.mrf.mxu0 }
 0x36d   : > { %v1747_v9 = vadd.f32 %v1746_v26, %v1705_v54 }
 0x36e   : > { %v1748_v55 = vpop.f32.mrf.mxu0 }
 0x36f   : > { %v1796_v0 = vcombine.low %v1745_v60, %v1747_v9 }
 0x370   : > { %v1785_v18 = vpop.f32.mrf.mxu1  ;;  %v1749_v1 = vpop.f32.mrf.mxu0 }
 0x371   : > { %1800 = vst [vmem:[%s272_s16] sm:$0x77] %v1796_v0  ;;  %v1786_v2 = vadd.f32 %v1785_v18, %v1705_v54 }
 0x372   : > { %v1787_v50 = vpop.f32.mrf.mxu1 }
 0x373   : > { %v1788_v20 = vadd.f32 %v1787_v50, %v1705_v54 }
 0x374   : > { %v1789_v7 = vpop.f32.mrf.mxu1 }
 0x375   : > { %v1797_v23 = vcombine.low %v1786_v2, %v1788_v20 }
 0x376   : > { %v1790_v31 = vpop.f32.mrf.mxu1 }
 0x377   : > { %1801 = vst [vmem:[%s272_s16 + $0x8] sm:$0x77] %v1797_v23 }
 0x378   : > { %2236 = shalt.err (!%p2233_p3)
}
 0x379   : > { %s2237_s9 = scalar_lea.hbm %s3941_s21, 256  ;;  %s2241_s15 = scalar_lea.hbm %s3983_s7, 1024 }
 0x37a   : > { %p2238_p4 = scmp.ne.s32.totalorder %s3941_s21, %s2237_s9  ;;  %p2242_p9 = scmp.lt.s32.totalorder %s3941_s21, %s3983_s7 }
 0x37b   : > { %p2243_p10 = scmp.lt.s32.totalorder %s2241_s15, %s2237_s9 }
 0x37c   : > { %p2239_p7 = pnand %p2238_p4, %p2365_p5 }
 0x37d   : > { %p2244_p11 = por %p2243_p10, %p2242_p9 }
 0x37e   : > { %p2240_p8 = pneg %p2239_p7 }
 0x380   : > { %p2245_p12 = pnand %p2244_p11, %p2240_p8 }
 0x382   : > { %2248 = shalt.err (!%p2245_p12)
}
 0x383   : > { %1917 = dma.vmem_to_hbm [thread:$0]  (%p2365_p5), %s1818_s18, 256, %s3941_s21, %s1803_s22  }
 0x384 PF: > { %p1923_p13 = scmp.ge.s32.totalorder %s2283_s27, 2  ;;  %s1829_s19 = sand.u32 1, %s2271_s24  }
 0x385   : > { %s1830_s20 = scalar_lea.sflag [#allocation3], %s1829_s19 }
 0x386   : > { %p1920_p0 = pnand %p1923_p13, %p2369_p6 }
 0x388   : > { %p1921_p1 = pneg %p1920_p0 }
 0x38a   : > { %2266 = dma.done.wait (%p1921_p1), %s1830_s20, 256  }
 0x38b   : > { %2268 = vsyncadd (%p1921_p1), %s1830_s20, 4294967040  ;;  %p17_p2 = scmp.ge.s32.totalorder %s2352_s30, 6   ;;  %s4355_s24 = smov %s2275_s25 }
 0x38c   : > { %s4356_s25 = smov %s2279_s26  ;;  %s4357_s26 = smov %s2363_s10 }
 0x38d   : > { %s4358_s27 = smov %s2352_s30  ;;  %19 = sbr.rel (!%p17_p2) target bundleno = 3 (0x3), region = 83 }
 0x392   :  { %1835 = vsyncpa [#allocation3], 1 }
 0x393   :  { %1837 = vsyncpa [#allocation3 + $0x1], 1 }

</bundles_post_ra>
